<compile_context>
chip_gen: v7x
topology: tpu7x:2x2x1
jax: 0.10.0
libtpu: 0.0.40
codegen_flags: <defaults>
</compile_context>

<pallas_src>
import functools
import math

import jax
import jax.numpy as jnp
from jax.experimental import pallas as pl
from jax.experimental.pallas import tpu as pltpu

_EPS = 1e-5
_VMEM_LIMIT = 32 * 1024 * 1024  # explicit scoped-VMEM budget (safe on v5e/v6e/v7x)


def _round_up(x, m):
    return (x + m - 1) // m * m


def _lane_tile(size, prefs):
    """Pad `size` to a multiple of 128 and pick the largest preferred tile dividing it."""
    p = _round_up(size, 128)
    for t in prefs:
        if p % t == 0:
            return t, p
    return 128, p


# --------------------------- Pallas kernels ---------------------------

def _matmul_stats_kernel(a_ref, w_ref, y_ref, sum_ref, sq_ref, acc_ref):
    """One (tm, tn) tile of A @ W accumulated over the K grid axis (bf16 in, f32 acc).

    On the last K step the accumulator is written out together with the per-tile
    per-channel sum and sum-of-squares (feeds the training-mode BN second pass).
    """
    k = pl.program_id(2)

    @pl.when(k == 0)
    def _():
        acc_ref[...] = jnp.zeros_like(acc_ref)

    acc_ref[...] += jnp.dot(a_ref[...], w_ref[...],
                            preferred_element_type=jnp.float32)

    @pl.when(k == pl.num_programs(2) - 1)
    def _():
        acc = acc_ref[...]
        y_ref[...] = acc
        s1 = jnp.sum(acc, axis=0, keepdims=True)          # (1, tn)
        s2 = jnp.sum(acc * acc, axis=0, keepdims=True)    # (1, tn)
        sum_ref[...] = s1.reshape(sum_ref.shape)
        sq_ref[...] = s2.reshape(sq_ref.shape)


def _bn_act_kernel(y_ref, scale_ref, shift_ref, o_ref, *, relu):
    out = y_ref[...] * scale_ref[...] + shift_ref[...]
    if relu:
        out = jnp.maximum(out, 0.0)
    o_ref[...] = out


def _bn_add_act_kernel(y_ref, scale_ref, shift_ref, res_ref, o_ref, *, relu):
    out = y_ref[...] * scale_ref[...] + shift_ref[...] + res_ref[...]
    if relu:
        out = jnp.maximum(out, 0.0)
    o_ref[...] = out


# --------------------------- kernel wrappers ---------------------------

def tiled_matmul_stats(a, w):
    """y = a @ w with bf16 MXU inputs, f32 accumulation, and per-channel BN partial stats.

    Returns (y_padded (Mp, Np) f32, col_sum (N,), col_sumsq (N,)).  Padded rows/cols of
    `a`/`w` are zero, so the column sums equal the sums over the true M rows.
    """
    M, K = a.shape
    K2, N = w.shape
    assert K == K2
    tn, Np = _lane_tile(N, (256, 128))
    tk, Kp = _lane_tile(K, (512, 256, 128))
    tm = min(256, _round_up(M, 128))
    Mp = _round_up(M, tm)
    gm, gn, gk = Mp // tm, Np // tn, Kp // tk

    a_p = jnp.pad(a, ((0, Mp - M), (0, Kp - K))).astype(jnp.bfloat16)
    w_p = jnp.pad(w, ((0, Kp - K), (0, Np - N))).astype(jnp.bfloat16)

    y, sums, sqs = pl.pallas_call(
        _matmul_stats_kernel,
        out_shape=(
            jax.ShapeDtypeStruct((Mp, Np), jnp.float32),
            jax.ShapeDtypeStruct((gm, 1, Np), jnp.float32),
            jax.ShapeDtypeStruct((gm, 1, Np), jnp.float32),
        ),
        grid=(gm, gn, gk),
        in_specs=[
            pl.BlockSpec((tm, tk), lambda i, j, k: (i, k)),
            pl.BlockSpec((tk, tn), lambda i, j, k: (k, j)),
        ],
        out_specs=(
            pl.BlockSpec((tm, tn), lambda i, j, k: (i, j)),
            pl.BlockSpec((1, 1, tn), lambda i, j, k: (i, 0, j)),
            pl.BlockSpec((1, 1, tn), lambda i, j, k: (i, 0, j)),
        ),
        scratch_shapes=[pltpu.VMEM((tm, tn), jnp.float32)],
        compiler_params=pltpu.CompilerParams(
            dimension_semantics=("parallel", "parallel", "arbitrary"),
            vmem_limit_bytes=_VMEM_LIMIT),
    )(a_p, w_p)

    col_sum = jnp.sum(sums[:, 0, :N], axis=0)
    col_sq = jnp.sum(sqs[:, 0, :N], axis=0)
    return y, col_sum, col_sq


def bn_act(y_pad, m, n, gamma, beta, col_sum, col_sq, *, relu, residual=None, eps=_EPS):
    """Training-mode BN (batch statistics over the M rows) + optional fused residual + ReLU."""
    Mp, Np = y_pad.shape
    mean = col_sum / m
    var = jnp.maximum(col_sq / m - mean * mean, 0.0)   # clamp: f32 cancellation can go < 0
    inv = jax.lax.rsqrt(var + eps)
    scale = gamma * inv
    shift = beta - mean * scale
    scale_p = jnp.pad(scale, (0, Np - n)).reshape(1, Np).astype(jnp.float32)
    shift_p = jnp.pad(shift, (0, Np - n)).reshape(1, Np).astype(jnp.float32)

    tm = 512 if Mp % 512 == 0 else (256 if Mp % 256 == 0 else 128)
    tn = 256 if Np % 256 == 0 else 128
    gm, gn = Mp // tm, Np // tn
    cparams = pltpu.CompilerParams(
        dimension_semantics=("parallel", "parallel"),
        vmem_limit_bytes=_VMEM_LIMIT)

    y_spec = pl.BlockSpec((tm, tn), lambda i, j: (i, j))
    vec_spec = pl.BlockSpec((1, tn), lambda i, j: (0, j))
    out_spec = pl.BlockSpec((tm, tn), lambda i, j: (i, j))

    if residual is None:
        out = pl.pallas_call(
            functools.partial(_bn_act_kernel, relu=relu),
            out_shape=jax.ShapeDtypeStruct((Mp, Np), jnp.float32),
            grid=(gm, gn),
            in_specs=[y_spec, vec_spec, vec_spec],
            out_specs=out_spec,
            compiler_params=cparams,
        )(y_pad, scale_p, shift_p)
    else:
        res_p = jnp.pad(residual.astype(jnp.float32), ((0, Mp - m), (0, Np - n)))
        out = pl.pallas_call(
            functools.partial(_bn_add_act_kernel, relu=relu),
            out_shape=jax.ShapeDtypeStruct((Mp, Np), jnp.float32),
            grid=(gm, gn),
            in_specs=[y_spec, vec_spec, vec_spec,
                      pl.BlockSpec((tm, tn), lambda i, j: (i, j))],
            out_specs=out_spec,
            compiler_params=cparams,
        )(y_pad, scale_p, shift_p, res_p)
    return out[:m, :n]


def conv_bn(x, w, bn, *, stride, padding, relu, residual=None):
    """NHWC conv (as a tiled matmul) -> training-mode BN -> (+residual) -> (ReLU)."""
    N, H, W, Cin = x.shape
    O, Cin2, kh, kw = w.shape
    assert Cin == Cin2
    Ho = (H + 2 * padding - kh) // stride + 1
    Wo = (W + 2 * padding - kw) // stride + 1
    xb = x.astype(jnp.bfloat16)                 # bf16 MXU inputs; also halves DMA bytes
    if kh == 1 and kw == 1 and padding == 0:
        if stride != 1:
            xb = xb[:, ::stride, ::stride, :]
        A = xb.reshape(N * Ho * Wo, Cin)
    else:
        # TODO(synk): replace wrapper-side im2col with a tap-decomposed K grid (kh*kw shifted
        # 1x1 matmuls DMA'd straight from the padded NHWC input) to cut HBM traffic further.
        xp = jnp.pad(xb, ((0, 0), (padding, padding), (padding, padding), (0, 0)))
        cols = []
        for dy in range(kh):
            for dx in range(kw):
                cols.append(xp[:, dy:dy + stride * Ho:stride,
                               dx:dx + stride * Wo:stride, :])
        A = jnp.concatenate(cols, axis=-1).reshape(N * Ho * Wo, kh * kw * Cin)
    Wm = jnp.transpose(w, (2, 3, 1, 0)).reshape(kh * kw * Cin, O).astype(jnp.bfloat16)

    y_pad, col_sum, col_sq = tiled_matmul_stats(A, Wm)
    res2 = None if residual is None else residual.reshape(N * Ho * Wo, O)
    out = bn_act(y_pad, N * Ho * Wo, O, bn["gamma"], bn["beta"], col_sum, col_sq,
                 relu=relu, residual=res2)
    return out.reshape(N, Ho, Wo, O)


# --------------------------- parameters & forward ---------------------------

def _init_conv(key, cout, cin, kh, kw):
    # kaiming_normal_(mode='fan_out', nonlinearity='relu')
    fan_out = cout * kh * kw
    std = math.sqrt(2.0 / fan_out)
    return std * jax.random.normal(key, (cout, cin, kh, kw), jnp.float32)


def _bn_params(c):
    # BN weight=1, bias=0 (PyTorch default init)
    return {"gamma": jnp.ones((c,), jnp.float32), "beta": jnp.zeros((c,), jnp.float32)}


def build_bottleneck_params(key, inplanes, planes, stride):
    expansion = 4
    k1, k2, k3, kd = jax.random.split(key, 4)
    params = {
        "conv1": _init_conv(k1, planes, inplanes, 1, 1), "bn1": _bn_params(planes),
        "conv2": _init_conv(k2, planes, planes, 3, 3), "bn2": _bn_params(planes),
        "conv3": _init_conv(k3, planes * expansion, planes, 1, 1),
        "bn3": _bn_params(planes * expansion),
    }
    if stride != 1 or inplanes != planes * expansion:
        params["downsample"] = {
            "conv": _init_conv(kd, planes * expansion, inplanes, 1, 1),
            "bn": _bn_params(planes * expansion)}
    return params


def bottleneck_forward(params, x_nchw, *, stride):
    """Bottleneck.forward: conv1/bn1/relu -> conv2/bn2/relu -> conv3/bn3 (+residual) -> relu."""
    x = jnp.transpose(x_nchw.astype(jnp.float32), (0, 2, 3, 1))   # NCHW -> NHWC

    out = conv_bn(x, params["conv1"], params["bn1"], stride=1, padding=0, relu=True)
    out = conv_bn(out, params["conv2"], params["bn2"], stride=stride, padding=1, relu=True)

    if "downsample" in params:
        identity = conv_bn(x, params["downsample"]["conv"], params["downsample"]["bn"],
                           stride=stride, padding=0, relu=False)
    else:
        identity = x

    # conv3 -> bn3 -> (+identity) -> ReLU; the residual add + ReLU is fused into the
    # BN normalize kernel's epilogue (no separate add_relu pass).
    out = conv_bn(out, params["conv3"], params["bn3"], stride=1, padding=0, relu=True,
                  residual=identity)
    return jnp.transpose(out, (0, 3, 1, 2))                        # NHWC -> NCHW


if __name__ == "__main__":
    key = jax.random.PRNGKey(0)
    kp, kx = jax.random.split(key)
    inplanes, planes, stride = 64, 16, 2
    params = build_bottleneck_params(kp, inplanes, planes, stride)
    x = jax.random.normal(kx, (2, inplanes, 16, 16), jnp.float32)   # NCHW, like PyTorch

    fwd = jax.jit(functools.partial(bottleneck_forward, stride=stride))
    out = jax.block_until_ready(fwd(params, x))
    assert out.shape == (2, planes * 4, 8, 8), out.shape
    assert bool(jnp.all(jnp.isfinite(out)))
    print("KERNEL_OK")
</pallas_src>

<mosaic_0001>
module attributes {stable_mosaic.version = 11 : i64} {
  func.func @_matmul_stats_kernel(%arg0: i32, %arg1: i32, %arg2: i32, %arg3: memref<256x128xbf16, #tpu.memory_space<vmem>>, %arg4: memref<128x128xbf16, #tpu.memory_space<vmem>>, %arg5: memref<256x128xf32, #tpu.memory_space<vmem>>, %arg6: memref<1x1x128xf32, #tpu.memory_space<vmem>>, %arg7: memref<1x1x128xf32, #tpu.memory_space<vmem>>, %arg8: memref<256x128xf32, #tpu.memory_space<vmem>>) attributes {dimension_semantics = [#tpu.dimension_semantics<parallel>, #tpu.dimension_semantics<parallel>, #tpu.dimension_semantics<arbitrary>], iteration_bounds = array<i64: 2, 1, 1>, scalar_prefetch = 0 : i64, scratch_operands = 1 : i64, tpu.core_type = #tpu.core_type<tc>, window_params = [{transform_indices = @transform_0, window_bounds = array<i64: 256, 128>}, {transform_indices = @transform_1, window_bounds = array<i64: 128, 128>}, {transform_indices = @transform_2, window_bounds = array<i64: 256, 128>}, {transform_indices = @transform_3, window_bounds = array<i64: 1, 1, 128>}, {transform_indices = @transform_4, window_bounds = array<i64: 1, 1, 128>}]} {
    %c0_i32 = arith.constant 0 : i32
    %0 = arith.cmpi eq, %arg2, %c0_i32 : i32
    %1 = arith.extui %0 : i1 to i32
    %c0_i32_0 = arith.constant 0 : i32
    %2 = arith.cmpi ne, %1, %c0_i32_0 : i32
    scf.if %2 {
      %cst_10 = arith.constant 0.000000e+00 : f32
      %12 = vector.broadcast %cst_10 : f32 to vector<256x128xf32>
      %c0_11 = arith.constant 0 : index
      %c0_12 = arith.constant 0 : index
      %13 = vector.load %arg8[%c0_11, %c0_12] : memref<256x128xf32, #tpu.memory_space<vmem>>, vector<256x128xf32>
      tpu.vector_store %arg8[%c0_11, %c0_12], %12 {strides = array<i32>} : memref<256x128xf32, #tpu.memory_space<vmem>>, vector<256x128xf32>,
    } else {
    }
    %c0 = arith.constant 0 : index
    %c0_1 = arith.constant 0 : index
    %3 = vector.load %arg8[%c0, %c0_1] : memref<256x128xf32, #tpu.memory_space<vmem>>, vector<256x128xf32>
    %c0_2 = arith.constant 0 : index
    %c0_3 = arith.constant 0 : index
    %4 = vector.load %arg3[%c0_2, %c0_3] : memref<256x128xbf16, #tpu.memory_space<vmem>>, vector<256x128xbf16>
    %c0_4 = arith.constant 0 : index
    %c0_5 = arith.constant 0 : index
    %5 = vector.load %arg4[%c0_4, %c0_5] : memref<128x128xbf16, #tpu.memory_space<vmem>>, vector<128x128xbf16>
    %cst = arith.constant dense<0.000000e+00> : vector<256x128xf32>
    %6 = tpu.matmul %4, %5, %cst {dimension_numbers = #tpu.dot_dimension_numbers<[1], [0], [0], [1], [0, 0, 1, 1], [], []>} : vector<256x128xbf16>, vector<128x128xbf16>, vector<256x128xf32> -> vector<256x128xf32>
    %7 = arith.addf %3, %6 : vector<256x128xf32>
    %c0_6 = arith.constant 0 : index
    %c0_7 = arith.constant 0 : index
    %8 = vector.load %arg8[%c0_6, %c0_7] : memref<256x128xf32, #tpu.memory_space<vmem>>, vector<256x128xf32>
    tpu.vector_store %arg8[%c0_6, %c0_7], %7 {strides = array<i32>} : memref<256x128xf32, #tpu.memory_space<vmem>>, vector<256x128xf32>,
    %c0_i32_8 = arith.constant 0 : i32
    %9 = arith.cmpi eq, %arg2, %c0_i32_8 : i32
    %10 = arith.extui %9 : i1 to i32
    %c0_i32_9 = arith.constant 0 : i32
    %11 = arith.cmpi ne, %10, %c0_i32_9 : i32
    scf.if %11 {
      %c0_10 = arith.constant 0 : index
      %c0_11 = arith.constant 0 : index
      %12 = vector.load %arg8[%c0_10, %c0_11] : memref<256x128xf32, #tpu.memory_space<vmem>>, vector<256x128xf32>
      %c0_12 = arith.constant 0 : index
      %c0_13 = arith.constant 0 : index
      %13 = vector.load %arg5[%c0_12, %c0_13] : memref<256x128xf32, #tpu.memory_space<vmem>>, vector<256x128xf32>
      tpu.vector_store %arg5[%c0_12, %c0_13], %12 {strides = array<i32>} : memref<256x128xf32, #tpu.memory_space<vmem>>, vector<256x128xf32>,
      %cst_14 = arith.constant dense<0.000000e+00> : vector<128xf32>
      %14 = vector.multi_reduction <add>, %12, %cst_14 [0] : vector<256x128xf32> to vector<128xf32>
      %15 = vector.shape_cast %14 : vector<128xf32> to vector<1x128xf32>
      %16 = arith.mulf %12, %12 : vector<256x128xf32>
      %cst_15 = arith.constant dense<0.000000e+00> : vector<128xf32>
      %17 = vector.multi_reduction <add>, %16, %cst_15 [0] : vector<256x128xf32> to vector<128xf32>
      %18 = vector.shape_cast %17 : vector<128xf32> to vector<1x128xf32>
      %19 = vector.shape_cast %15 : vector<1x128xf32> to vector<1x1x128xf32>
      %c0_16 = arith.constant 0 : index
      %c0_17 = arith.constant 0 : index
      %c0_18 = arith.constant 0 : index
      %20 = vector.load %arg6[%c0_16, %c0_17, %c0_18] : memref<1x1x128xf32, #tpu.memory_space<vmem>>, vector<1x1x128xf32>
      tpu.vector_store %arg6[%c0_16, %c0_17, %c0_18], %19 {strides = array<i32>} : memref<1x1x128xf32, #tpu.memory_space<vmem>>, vector<1x1x128xf32>,
      %21 = vector.shape_cast %18 : vector<1x128xf32> to vector<1x1x128xf32>
      %c0_19 = arith.constant 0 : index
      %c0_20 = arith.constant 0 : index
      %c0_21 = arith.constant 0 : index
      %22 = vector.load %arg7[%c0_19, %c0_20, %c0_21] : memref<1x1x128xf32, #tpu.memory_space<vmem>>, vector<1x1x128xf32>
      tpu.vector_store %arg7[%c0_19, %c0_20, %c0_21], %21 {strides = array<i32>} : memref<1x1x128xf32, #tpu.memory_space<vmem>>, vector<1x1x128xf32>,
    } else {
    }
    return
  }
  func.func @transform_0(%arg0: i32, %arg1: i32, %arg2: i32) -> (i32, i32) {
    %c0_i32 = arith.constant 0 : i32
    return %arg0, %arg2 : i32, i32
  }
  func.func @transform_1(%arg0: i32, %arg1: i32, %arg2: i32) -> (i32, i32) {
    %c0_i32 = arith.constant 0 : i32
    return %arg2, %arg1 : i32, i32
  }
  func.func @transform_2(%arg0: i32, %arg1: i32, %arg2: i32) -> (i32, i32) {
    %c0_i32 = arith.constant 0 : i32
    return %arg0, %arg1 : i32, i32
  }
  func.func @transform_3(%arg0: i32, %arg1: i32, %arg2: i32) -> (i32, i32, i32) {
    %c0_i32 = arith.constant 0 : i32
    %c0_i32_0 = arith.constant 0 : i32
    return %arg0, %c0_i32, %arg1 : i32, i32, i32
  }
  func.func @transform_4(%arg0: i32, %arg1: i32, %arg2: i32) -> (i32, i32, i32) {
    %c0_i32 = arith.constant 0 : i32
    %c0_i32_0 = arith.constant 0 : i32
    return %arg0, %c0_i32, %arg1 : i32, i32, i32
  }
}

module attributes {stable_mosaic.version = 11 : i64} {
  func.func @_bn_act_kernel(%arg0: i32, %arg1: i32, %arg2: memref<512x128xf32, #tpu.memory_space<vmem>>, %arg3: memref<1x128xf32, #tpu.memory_space<vmem>>, %arg4: memref<1x128xf32, #tpu.memory_space<vmem>>, %arg5: memref<512x128xf32, #tpu.memory_space<vmem>>) attributes {dimension_semantics = [#tpu.dimension_semantics<parallel>, #tpu.dimension_semantics<parallel>], iteration_bounds = array<i64: 1, 1>, scalar_prefetch = 0 : i64, scratch_operands = 0 : i64, tpu.core_type = #tpu.core_type<tc>, window_params = [{transform_indices = @transform_0, window_bounds = array<i64: 512, 128>}, {transform_indices = @transform_1, window_bounds = array<i64: 1, 128>}, {transform_indices = @transform_2, window_bounds = array<i64: 1, 128>}, {transform_indices = @transform_3, window_bounds = array<i64: 512, 128>}]} {
    %c0 = arith.constant 0 : index
    %c0_0 = arith.constant 0 : index
    %0 = vector.load %arg2[%c0, %c0_0] : memref<512x128xf32, #tpu.memory_space<vmem>>, vector<512x128xf32>
    %c0_1 = arith.constant 0 : index
    %c0_2 = arith.constant 0 : index
    %1 = vector.load %arg3[%c0_1, %c0_2] : memref<1x128xf32, #tpu.memory_space<vmem>>, vector<1x128xf32>
    %2 = vector.broadcast %1 : vector<1x128xf32> to vector<512x128xf32>
    %3 = arith.mulf %0, %2 : vector<512x128xf32>
    %c0_3 = arith.constant 0 : index
    %c0_4 = arith.constant 0 : index
    %4 = vector.load %arg4[%c0_3, %c0_4] : memref<1x128xf32, #tpu.memory_space<vmem>>, vector<1x128xf32>
    %5 = vector.broadcast %4 : vector<1x128xf32> to vector<512x128xf32>
    %6 = arith.addf %3, %5 : vector<512x128xf32>
    %cst = arith.constant 0.000000e+00 : f32
    %7 = vector.broadcast %cst : f32 to vector<512x128xf32>
    %8 = arith.maximumf %6, %7 : vector<512x128xf32>
    %c0_5 = arith.constant 0 : index
    %c0_6 = arith.constant 0 : index
    %9 = vector.load %arg5[%c0_5, %c0_6] : memref<512x128xf32, #tpu.memory_space<vmem>>, vector<512x128xf32>
    tpu.vector_store %arg5[%c0_5, %c0_6], %8 {strides = array<i32>} : memref<512x128xf32, #tpu.memory_space<vmem>>, vector<512x128xf32>,
    return
  }
  func.func @transform_0(%arg0: i32, %arg1: i32) -> (i32, i32) {
    %c0_i32 = arith.constant 0 : i32
    return %arg0, %arg1 : i32, i32
  }
  func.func @transform_1(%arg0: i32, %arg1: i32) -> (i32, i32) {
    %c0_i32 = arith.constant 0 : i32
    %c0_i32_0 = arith.constant 0 : i32
    return %c0_i32, %arg1 : i32, i32
  }
  func.func @transform_2(%arg0: i32, %arg1: i32) -> (i32, i32) {
    %c0_i32 = arith.constant 0 : i32
    %c0_i32_0 = arith.constant 0 : i32
    return %c0_i32, %arg1 : i32, i32
  }
  func.func @transform_3(%arg0: i32, %arg1: i32) -> (i32, i32) {
    %c0_i32 = arith.constant 0 : i32
    return %arg0, %arg1 : i32, i32
  }
}

module attributes {stable_mosaic.version = 11 : i64} {
  func.func @_matmul_stats_kernel(%arg0: i32, %arg1: i32, %arg2: i32, %arg3: memref<128x256xbf16, #tpu.memory_space<vmem>>, %arg4: memref<256x128xbf16, #tpu.memory_space<vmem>>, %arg5: memref<128x128xf32, #tpu.memory_space<vmem>>, %arg6: memref<1x1x128xf32, #tpu.memory_space<vmem>>, %arg7: memref<1x1x128xf32, #tpu.memory_space<vmem>>, %arg8: memref<128x128xf32, #tpu.memory_space<vmem>>) attributes {dimension_semantics = [#tpu.dimension_semantics<parallel>, #tpu.dimension_semantics<parallel>, #tpu.dimension_semantics<arbitrary>], iteration_bounds = array<i64: 1, 1, 1>, scalar_prefetch = 0 : i64, scratch_operands = 1 : i64, tpu.core_type = #tpu.core_type<tc>, window_params = [{transform_indices = @transform_0, window_bounds = array<i64: 128, 256>}, {transform_indices = @transform_1, window_bounds = array<i64: 256, 128>}, {transform_indices = @transform_2, window_bounds = array<i64: 128, 128>}, {transform_indices = @transform_3, window_bounds = array<i64: 1, 1, 128>}, {transform_indices = @transform_4, window_bounds = array<i64: 1, 1, 128>}]} {
    %c0_i32 = arith.constant 0 : i32
    %0 = arith.cmpi eq, %arg2, %c0_i32 : i32
    %1 = arith.extui %0 : i1 to i32
    %c0_i32_0 = arith.constant 0 : i32
    %2 = arith.cmpi ne, %1, %c0_i32_0 : i32
    scf.if %2 {
      %cst_10 = arith.constant 0.000000e+00 : f32
      %12 = vector.broadcast %cst_10 : f32 to vector<128x128xf32>
      %c0_11 = arith.constant 0 : index
      %c0_12 = arith.constant 0 : index
      %13 = vector.load %arg8[%c0_11, %c0_12] : memref<128x128xf32, #tpu.memory_space<vmem>>, vector<128x128xf32>
      tpu.vector_store %arg8[%c0_11, %c0_12], %12 {strides = array<i32>} : memref<128x128xf32, #tpu.memory_space<vmem>>, vector<128x128xf32>,
    } else {
    }
    %c0 = arith.constant 0 : index
    %c0_1 = arith.constant 0 : index
    %3 = vector.load %arg8[%c0, %c0_1] : memref<128x128xf32, #tpu.memory_space<vmem>>, vector<128x128xf32>
    %c0_2 = arith.constant 0 : index
    %c0_3 = arith.constant 0 : index
    %4 = vector.load %arg3[%c0_2, %c0_3] : memref<128x256xbf16, #tpu.memory_space<vmem>>, vector<128x256xbf16>
    %c0_4 = arith.constant 0 : index
    %c0_5 = arith.constant 0 : index
    %5 = vector.load %arg4[%c0_4, %c0_5] : memref<256x128xbf16, #tpu.memory_space<vmem>>, vector<256x128xbf16>
    %cst = arith.constant dense<0.000000e+00> : vector<128x128xf32>
    %6 = tpu.matmul %4, %5, %cst {dimension_numbers = #tpu.dot_dimension_numbers<[1], [0], [0], [1], [0, 0, 1, 1], [], []>} : vector<128x256xbf16>, vector<256x128xbf16>, vector<128x128xf32> -> vector<128x128xf32>
    %7 = arith.addf %3, %6 : vector<128x128xf32>
    %c0_6 = arith.constant 0 : index
    %c0_7 = arith.constant 0 : index
    %8 = vector.load %arg8[%c0_6, %c0_7] : memref<128x128xf32, #tpu.memory_space<vmem>>, vector<128x128xf32>
    tpu.vector_store %arg8[%c0_6, %c0_7], %7 {strides = array<i32>} : memref<128x128xf32, #tpu.memory_space<vmem>>, vector<128x128xf32>,
    %c0_i32_8 = arith.constant 0 : i32
    %9 = arith.cmpi eq, %arg2, %c0_i32_8 : i32
    %10 = arith.extui %9 : i1 to i32
    %c0_i32_9 = arith.constant 0 : i32
    %11 = arith.cmpi ne, %10, %c0_i32_9 : i32
    scf.if %11 {
      %c0_10 = arith.constant 0 : index
      %c0_11 = arith.constant 0 : index
      %12 = vector.load %arg8[%c0_10, %c0_11] : memref<128x128xf32, #tpu.memory_space<vmem>>, vector<128x128xf32>
      %c0_12 = arith.constant 0 : index
      %c0_13 = arith.constant 0 : index
      %13 = vector.load %arg5[%c0_12, %c0_13] : memref<128x128xf32, #tpu.memory_space<vmem>>, vector<128x128xf32>
      tpu.vector_store %arg5[%c0_12, %c0_13], %12 {strides = array<i32>} : memref<128x128xf32, #tpu.memory_space<vmem>>, vector<128x128xf32>,
      %cst_14 = arith.constant dense<0.000000e+00> : vector<128xf32>
      %14 = vector.multi_reduction <add>, %12, %cst_14 [0] : vector<128x128xf32> to vector<128xf32>
      %15 = vector.shape_cast %14 : vector<128xf32> to vector<1x128xf32>
      %16 = arith.mulf %12, %12 : vector<128x128xf32>
      %cst_15 = arith.constant dense<0.000000e+00> : vector<128xf32>
      %17 = vector.multi_reduction <add>, %16, %cst_15 [0] : vector<128x128xf32> to vector<128xf32>
      %18 = vector.shape_cast %17 : vector<128xf32> to vector<1x128xf32>
      %19 = vector.shape_cast %15 : vector<1x128xf32> to vector<1x1x128xf32>
      %c0_16 = arith.constant 0 : index
      %c0_17 = arith.constant 0 : index
      %c0_18 = arith.constant 0 : index
      %20 = vector.load %arg6[%c0_16, %c0_17, %c0_18] : memref<1x1x128xf32, #tpu.memory_space<vmem>>, vector<1x1x128xf32>
      tpu.vector_store %arg6[%c0_16, %c0_17, %c0_18], %19 {strides = array<i32>} : memref<1x1x128xf32, #tpu.memory_space<vmem>>, vector<1x1x128xf32>,
      %21 = vector.shape_cast %18 : vector<1x128xf32> to vector<1x1x128xf32>
      %c0_19 = arith.constant 0 : index
      %c0_20 = arith.constant 0 : index
      %c0_21 = arith.constant 0 : index
      %22 = vector.load %arg7[%c0_19, %c0_20, %c0_21] : memref<1x1x128xf32, #tpu.memory_space<vmem>>, vector<1x1x128xf32>
      tpu.vector_store %arg7[%c0_19, %c0_20, %c0_21], %21 {strides = array<i32>} : memref<1x1x128xf32, #tpu.memory_space<vmem>>, vector<1x1x128xf32>,
    } else {
    }
    return
  }
  func.func @transform_0(%arg0: i32, %arg1: i32, %arg2: i32) -> (i32, i32) {
    %c0_i32 = arith.constant 0 : i32
    return %arg0, %arg2 : i32, i32
  }
  func.func @transform_1(%arg0: i32, %arg1: i32, %arg2: i32) -> (i32, i32) {
    %c0_i32 = arith.constant 0 : i32
    return %arg2, %arg1 : i32, i32
  }
  func.func @transform_2(%arg0: i32, %arg1: i32, %arg2: i32) -> (i32, i32) {
    %c0_i32 = arith.constant 0 : i32
    return %arg0, %arg1 : i32, i32
  }
  func.func @transform_3(%arg0: i32, %arg1: i32, %arg2: i32) -> (i32, i32, i32) {
    %c0_i32 = arith.constant 0 : i32
    %c0_i32_0 = arith.constant 0 : i32
    return %arg0, %c0_i32, %arg1 : i32, i32, i32
  }
  func.func @transform_4(%arg0: i32, %arg1: i32, %arg2: i32) -> (i32, i32, i32) {
    %c0_i32 = arith.constant 0 : i32
    %c0_i32_0 = arith.constant 0 : i32
    return %arg0, %c0_i32, %arg1 : i32, i32, i32
  }
}

module attributes {stable_mosaic.version = 11 : i64} {
  func.func @_bn_act_kernel(%arg0: i32, %arg1: i32, %arg2: memref<128x128xf32, #tpu.memory_space<vmem>>, %arg3: memref<1x128xf32, #tpu.memory_space<vmem>>, %arg4: memref<1x128xf32, #tpu.memory_space<vmem>>, %arg5: memref<128x128xf32, #tpu.memory_space<vmem>>) attributes {dimension_semantics = [#tpu.dimension_semantics<parallel>, #tpu.dimension_semantics<parallel>], iteration_bounds = array<i64: 1, 1>, scalar_prefetch = 0 : i64, scratch_operands = 0 : i64, tpu.core_type = #tpu.core_type<tc>, window_params = [{transform_indices = @transform_0, window_bounds = array<i64: 128, 128>}, {transform_indices = @transform_1, window_bounds = array<i64: 1, 128>}, {transform_indices = @transform_2, window_bounds = array<i64: 1, 128>}, {transform_indices = @transform_3, window_bounds = array<i64: 128, 128>}]} {
    %c0 = arith.constant 0 : index
    %c0_0 = arith.constant 0 : index
    %0 = vector.load %arg2[%c0, %c0_0] : memref<128x128xf32, #tpu.memory_space<vmem>>, vector<128x128xf32>
    %c0_1 = arith.constant 0 : index
    %c0_2 = arith.constant 0 : index
    %1 = vector.load %arg3[%c0_1, %c0_2] : memref<1x128xf32, #tpu.memory_space<vmem>>, vector<1x128xf32>
    %2 = vector.broadcast %1 : vector<1x128xf32> to vector<128x128xf32>
    %3 = arith.mulf %0, %2 : vector<128x128xf32>
    %c0_3 = arith.constant 0 : index
    %c0_4 = arith.constant 0 : index
    %4 = vector.load %arg4[%c0_3, %c0_4] : memref<1x128xf32, #tpu.memory_space<vmem>>, vector<1x128xf32>
    %5 = vector.broadcast %4 : vector<1x128xf32> to vector<128x128xf32>
    %6 = arith.addf %3, %5 : vector<128x128xf32>
    %cst = arith.constant 0.000000e+00 : f32
    %7 = vector.broadcast %cst : f32 to vector<128x128xf32>
    %8 = arith.maximumf %6, %7 : vector<128x128xf32>
    %c0_5 = arith.constant 0 : index
    %c0_6 = arith.constant 0 : index
    %9 = vector.load %arg5[%c0_5, %c0_6] : memref<128x128xf32, #tpu.memory_space<vmem>>, vector<128x128xf32>
    tpu.vector_store %arg5[%c0_5, %c0_6], %8 {strides = array<i32>} : memref<128x128xf32, #tpu.memory_space<vmem>>, vector<128x128xf32>,
    return
  }
  func.func @transform_0(%arg0: i32, %arg1: i32) -> (i32, i32) {
    %c0_i32 = arith.constant 0 : i32
    return %arg0, %arg1 : i32, i32
  }
  func.func @transform_1(%arg0: i32, %arg1: i32) -> (i32, i32) {
    %c0_i32 = arith.constant 0 : i32
    %c0_i32_0 = arith.constant 0 : i32
    return %c0_i32, %arg1 : i32, i32
  }
  func.func @transform_2(%arg0: i32, %arg1: i32) -> (i32, i32) {
    %c0_i32 = arith.constant 0 : i32
    %c0_i32_0 = arith.constant 0 : i32
    return %c0_i32, %arg1 : i32, i32
  }
  func.func @transform_3(%arg0: i32, %arg1: i32) -> (i32, i32) {
    %c0_i32 = arith.constant 0 : i32
    return %arg0, %arg1 : i32, i32
  }
}

module attributes {stable_mosaic.version = 11 : i64} {
  func.func @_matmul_stats_kernel(%arg0: i32, %arg1: i32, %arg2: i32, %arg3: memref<128x128xbf16, #tpu.memory_space<vmem>>, %arg4: memref<128x128xbf16, #tpu.memory_space<vmem>>, %arg5: memref<128x128xf32, #tpu.memory_space<vmem>>, %arg6: memref<1x1x128xf32, #tpu.memory_space<vmem>>, %arg7: memref<1x1x128xf32, #tpu.memory_space<vmem>>, %arg8: memref<128x128xf32, #tpu.memory_space<vmem>>) attributes {dimension_semantics = [#tpu.dimension_semantics<parallel>, #tpu.dimension_semantics<parallel>, #tpu.dimension_semantics<arbitrary>], iteration_bounds = array<i64: 1, 1, 1>, scalar_prefetch = 0 : i64, scratch_operands = 1 : i64, tpu.core_type = #tpu.core_type<tc>, window_params = [{transform_indices = @transform_0, window_bounds = array<i64: 128, 128>}, {transform_indices = @transform_1, window_bounds = array<i64: 128, 128>}, {transform_indices = @transform_2, window_bounds = array<i64: 128, 128>}, {transform_indices = @transform_3, window_bounds = array<i64: 1, 1, 128>}, {transform_indices = @transform_4, window_bounds = array<i64: 1, 1, 128>}]} {
    %c0_i32 = arith.constant 0 : i32
    %0 = arith.cmpi eq, %arg2, %c0_i32 : i32
    %1 = arith.extui %0 : i1 to i32
    %c0_i32_0 = arith.constant 0 : i32
    %2 = arith.cmpi ne, %1, %c0_i32_0 : i32
    scf.if %2 {
      %cst_10 = arith.constant 0.000000e+00 : f32
      %12 = vector.broadcast %cst_10 : f32 to vector<128x128xf32>
      %c0_11 = arith.constant 0 : index
      %c0_12 = arith.constant 0 : index
      %13 = vector.load %arg8[%c0_11, %c0_12] : memref<128x128xf32, #tpu.memory_space<vmem>>, vector<128x128xf32>
      tpu.vector_store %arg8[%c0_11, %c0_12], %12 {strides = array<i32>} : memref<128x128xf32, #tpu.memory_space<vmem>>, vector<128x128xf32>,
    } else {
    }
    %c0 = arith.constant 0 : index
    %c0_1 = arith.constant 0 : index
    %3 = vector.load %arg8[%c0, %c0_1] : memref<128x128xf32, #tpu.memory_space<vmem>>, vector<128x128xf32>
    %c0_2 = arith.constant 0 : index
    %c0_3 = arith.constant 0 : index
    %4 = vector.load %arg3[%c0_2, %c0_3] : memref<128x128xbf16, #tpu.memory_space<vmem>>, vector<128x128xbf16>
    %c0_4 = arith.constant 0 : index
    %c0_5 = arith.constant 0 : index
    %5 = vector.load %arg4[%c0_4, %c0_5] : memref<128x128xbf16, #tpu.memory_space<vmem>>, vector<128x128xbf16>
    %cst = arith.constant dense<0.000000e+00> : vector<128x128xf32>
    %6 = tpu.matmul %4, %5, %cst {dimension_numbers = #tpu.dot_dimension_numbers<[1], [0], [0], [1], [0, 0, 1, 1], [], []>} : vector<128x128xbf16>, vector<128x128xbf16>, vector<128x128xf32> -> vector<128x128xf32>
    %7 = arith.addf %3, %6 : vector<128x128xf32>
    %c0_6 = arith.constant 0 : index
    %c0_7 = arith.constant 0 : index
    %8 = vector.load %arg8[%c0_6, %c0_7] : memref<128x128xf32, #tpu.memory_space<vmem>>, vector<128x128xf32>
    tpu.vector_store %arg8[%c0_6, %c0_7], %7 {strides = array<i32>} : memref<128x128xf32, #tpu.memory_space<vmem>>, vector<128x128xf32>,
    %c0_i32_8 = arith.constant 0 : i32
    %9 = arith.cmpi eq, %arg2, %c0_i32_8 : i32
    %10 = arith.extui %9 : i1 to i32
    %c0_i32_9 = arith.constant 0 : i32
    %11 = arith.cmpi ne, %10, %c0_i32_9 : i32
    scf.if %11 {
      %c0_10 = arith.constant 0 : index
      %c0_11 = arith.constant 0 : index
      %12 = vector.load %arg8[%c0_10, %c0_11] : memref<128x128xf32, #tpu.memory_space<vmem>>, vector<128x128xf32>
      %c0_12 = arith.constant 0 : index
      %c0_13 = arith.constant 0 : index
      %13 = vector.load %arg5[%c0_12, %c0_13] : memref<128x128xf32, #tpu.memory_space<vmem>>, vector<128x128xf32>
      tpu.vector_store %arg5[%c0_12, %c0_13], %12 {strides = array<i32>} : memref<128x128xf32, #tpu.memory_space<vmem>>, vector<128x128xf32>,
      %cst_14 = arith.constant dense<0.000000e+00> : vector<128xf32>
      %14 = vector.multi_reduction <add>, %12, %cst_14 [0] : vector<128x128xf32> to vector<128xf32>
      %15 = vector.shape_cast %14 : vector<128xf32> to vector<1x128xf32>
      %16 = arith.mulf %12, %12 : vector<128x128xf32>
      %cst_15 = arith.constant dense<0.000000e+00> : vector<128xf32>
      %17 = vector.multi_reduction <add>, %16, %cst_15 [0] : vector<128x128xf32> to vector<128xf32>
      %18 = vector.shape_cast %17 : vector<128xf32> to vector<1x128xf32>
      %19 = vector.shape_cast %15 : vector<1x128xf32> to vector<1x1x128xf32>
      %c0_16 = arith.constant 0 : index
      %c0_17 = arith.constant 0 : index
      %c0_18 = arith.constant 0 : index
      %20 = vector.load %arg6[%c0_16, %c0_17, %c0_18] : memref<1x1x128xf32, #tpu.memory_space<vmem>>, vector<1x1x128xf32>
      tpu.vector_store %arg6[%c0_16, %c0_17, %c0_18], %19 {strides = array<i32>} : memref<1x1x128xf32, #tpu.memory_space<vmem>>, vector<1x1x128xf32>,
      %21 = vector.shape_cast %18 : vector<1x128xf32> to vector<1x1x128xf32>
      %c0_19 = arith.constant 0 : index
      %c0_20 = arith.constant 0 : index
      %c0_21 = arith.constant 0 : index
      %22 = vector.load %arg7[%c0_19, %c0_20, %c0_21] : memref<1x1x128xf32, #tpu.memory_space<vmem>>, vector<1x1x128xf32>
      tpu.vector_store %arg7[%c0_19, %c0_20, %c0_21], %21 {strides = array<i32>} : memref<1x1x128xf32, #tpu.memory_space<vmem>>, vector<1x1x128xf32>,
    } else {
    }
    return
  }
  func.func @transform_0(%arg0: i32, %arg1: i32, %arg2: i32) -> (i32, i32) {
    %c0_i32 = arith.constant 0 : i32
    return %arg0, %arg2 : i32, i32
  }
  func.func @transform_1(%arg0: i32, %arg1: i32, %arg2: i32) -> (i32, i32) {
    %c0_i32 = arith.constant 0 : i32
    return %arg2, %arg1 : i32, i32
  }
  func.func @transform_2(%arg0: i32, %arg1: i32, %arg2: i32) -> (i32, i32) {
    %c0_i32 = arith.constant 0 : i32
    return %arg0, %arg1 : i32, i32
  }
  func.func @transform_3(%arg0: i32, %arg1: i32, %arg2: i32) -> (i32, i32, i32) {
    %c0_i32 = arith.constant 0 : i32
    %c0_i32_0 = arith.constant 0 : i32
    return %arg0, %c0_i32, %arg1 : i32, i32, i32
  }
  func.func @transform_4(%arg0: i32, %arg1: i32, %arg2: i32) -> (i32, i32, i32) {
    %c0_i32 = arith.constant 0 : i32
    %c0_i32_0 = arith.constant 0 : i32
    return %arg0, %c0_i32, %arg1 : i32, i32, i32
  }
}

module attributes {stable_mosaic.version = 11 : i64} {
  func.func @_bn_add_act_kernel(%arg0: i32, %arg1: i32, %arg2: memref<128x128xf32, #tpu.memory_space<vmem>>, %arg3: memref<1x128xf32, #tpu.memory_space<vmem>>, %arg4: memref<1x128xf32, #tpu.memory_space<vmem>>, %arg5: memref<128x128xf32, #tpu.memory_space<vmem>>, %arg6: memref<128x128xf32, #tpu.memory_space<vmem>>) attributes {dimension_semantics = [#tpu.dimension_semantics<parallel>, #tpu.dimension_semantics<parallel>], iteration_bounds = array<i64: 1, 1>, scalar_prefetch = 0 : i64, scratch_operands = 0 : i64, tpu.core_type = #tpu.core_type<tc>, window_params = [{transform_indices = @transform_0, window_bounds = array<i64: 128, 128>}, {transform_indices = @transform_1, window_bounds = array<i64: 1, 128>}, {transform_indices = @transform_2, window_bounds = array<i64: 1, 128>}, {transform_indices = @transform_3, window_bounds = array<i64: 128, 128>}, {transform_indices = @transform_4, window_bounds = array<i64: 128, 128>}]} {
    %c0 = arith.constant 0 : index
    %c0_0 = arith.constant 0 : index
    %0 = vector.load %arg2[%c0, %c0_0] : memref<128x128xf32, #tpu.memory_space<vmem>>, vector<128x128xf32>
    %c0_1 = arith.constant 0 : index
    %c0_2 = arith.constant 0 : index
    %1 = vector.load %arg3[%c0_1, %c0_2] : memref<1x128xf32, #tpu.memory_space<vmem>>, vector<1x128xf32>
    %2 = vector.broadcast %1 : vector<1x128xf32> to vector<128x128xf32>
    %3 = arith.mulf %0, %2 : vector<128x128xf32>
    %c0_3 = arith.constant 0 : index
    %c0_4 = arith.constant 0 : index
    %4 = vector.load %arg4[%c0_3, %c0_4] : memref<1x128xf32, #tpu.memory_space<vmem>>, vector<1x128xf32>
    %5 = vector.broadcast %4 : vector<1x128xf32> to vector<128x128xf32>
    %6 = arith.addf %3, %5 : vector<128x128xf32>
    %c0_5 = arith.constant 0 : index
    %c0_6 = arith.constant 0 : index
    %7 = vector.load %arg5[%c0_5, %c0_6] : memref<128x128xf32, #tpu.memory_space<vmem>>, vector<128x128xf32>
    %8 = arith.addf %6, %7 : vector<128x128xf32>
    %cst = arith.constant 0.000000e+00 : f32
    %9 = vector.broadcast %cst : f32 to vector<128x128xf32>
    %10 = arith.maximumf %8, %9 : vector<128x128xf32>
    %c0_7 = arith.constant 0 : index
    %c0_8 = arith.constant 0 : index
    %11 = vector.load %arg6[%c0_7, %c0_8] : memref<128x128xf32, #tpu.memory_space<vmem>>, vector<128x128xf32>
    tpu.vector_store %arg6[%c0_7, %c0_8], %10 {strides = array<i32>} : memref<128x128xf32, #tpu.memory_space<vmem>>, vector<128x128xf32>,
    return
  }
  func.func @transform_0(%arg0: i32, %arg1: i32) -> (i32, i32) {
    %c0_i32 = arith.constant 0 : i32
    return %arg0, %arg1 : i32, i32
  }
  func.func @transform_1(%arg0: i32, %arg1: i32) -> (i32, i32) {
    %c0_i32 = arith.constant 0 : i32
    %c0_i32_0 = arith.constant 0 : i32
    return %c0_i32, %arg1 : i32, i32
  }
  func.func @transform_2(%arg0: i32, %arg1: i32) -> (i32, i32) {
    %c0_i32 = arith.constant 0 : i32
    %c0_i32_0 = arith.constant 0 : i32
    return %c0_i32, %arg1 : i32, i32
  }
  func.func @transform_3(%arg0: i32, %arg1: i32) -> (i32, i32) {
    %c0_i32 = arith.constant 0 : i32
    return %arg0, %arg1 : i32, i32
  }
  func.func @transform_4(%arg0: i32, %arg1: i32) -> (i32, i32) {
    %c0_i32 = arith.constant 0 : i32
    return %arg0, %arg1 : i32, i32
  }
}

module attributes {stable_mosaic.version = 11 : i64} {
  func.func @_bn_act_kernel(%arg0: i32, %arg1: i32, %arg2: memref<128x128xf32, #tpu.memory_space<vmem>>, %arg3: memref<1x128xf32, #tpu.memory_space<vmem>>, %arg4: memref<1x128xf32, #tpu.memory_space<vmem>>, %arg5: memref<128x128xf32, #tpu.memory_space<vmem>>) attributes {dimension_semantics = [#tpu.dimension_semantics<parallel>, #tpu.dimension_semantics<parallel>], iteration_bounds = array<i64: 1, 1>, scalar_prefetch = 0 : i64, scratch_operands = 0 : i64, tpu.core_type = #tpu.core_type<tc>, window_params = [{transform_indices = @transform_0, window_bounds = array<i64: 128, 128>}, {transform_indices = @transform_1, window_bounds = array<i64: 1, 128>}, {transform_indices = @transform_2, window_bounds = array<i64: 1, 128>}, {transform_indices = @transform_3, window_bounds = array<i64: 128, 128>}]} {
    %c0 = arith.constant 0 : index
    %c0_0 = arith.constant 0 : index
    %0 = vector.load %arg2[%c0, %c0_0] : memref<128x128xf32, #tpu.memory_space<vmem>>, vector<128x128xf32>
    %c0_1 = arith.constant 0 : index
    %c0_2 = arith.constant 0 : index
    %1 = vector.load %arg3[%c0_1, %c0_2] : memref<1x128xf32, #tpu.memory_space<vmem>>, vector<1x128xf32>
    %2 = vector.broadcast %1 : vector<1x128xf32> to vector<128x128xf32>
    %3 = arith.mulf %0, %2 : vector<128x128xf32>
    %c0_3 = arith.constant 0 : index
    %c0_4 = arith.constant 0 : index
    %4 = vector.load %arg4[%c0_3, %c0_4] : memref<1x128xf32, #tpu.memory_space<vmem>>, vector<1x128xf32>
    %5 = vector.broadcast %4 : vector<1x128xf32> to vector<128x128xf32>
    %6 = arith.addf %3, %5 : vector<128x128xf32>
    %c0_5 = arith.constant 0 : index
    %c0_6 = arith.constant 0 : index
    %7 = vector.load %arg5[%c0_5, %c0_6] : memref<128x128xf32, #tpu.memory_space<vmem>>, vector<128x128xf32>
    tpu.vector_store %arg5[%c0_5, %c0_6], %6 {strides = array<i32>} : memref<128x128xf32, #tpu.memory_space<vmem>>, vector<128x128xf32>,
    return
  }
  func.func @transform_0(%arg0: i32, %arg1: i32) -> (i32, i32) {
    %c0_i32 = arith.constant 0 : i32
    return %arg0, %arg1 : i32, i32
  }
  func.func @transform_1(%arg0: i32, %arg1: i32) -> (i32, i32) {
    %c0_i32 = arith.constant 0 : i32
    %c0_i32_0 = arith.constant 0 : i32
    return %c0_i32, %arg1 : i32, i32
  }
  func.func @transform_2(%arg0: i32, %arg1: i32) -> (i32, i32) {
    %c0_i32 = arith.constant 0 : i32
    %c0_i32_0 = arith.constant 0 : i32
    return %c0_i32, %arg1 : i32, i32
  }
  func.func @transform_3(%arg0: i32, %arg1: i32) -> (i32, i32) {
    %c0_i32 = arith.constant 0 : i32
    return %arg0, %arg1 : i32, i32
  }
}

</mosaic_0001>

<bundles_post_ra>
// kernel: bottleneck_forward.9
= control target key start
LH: loop header
LB: loop body
LE: loop exit
PB: predicated region body
PF: predicated region fallthrough
CT: control target
= control target key end

     0   :  { %s896_s0 = inlined_call_operand.vmem [shape: f32[512,128], index: 0, kind: input, shape index: {}]   ;;  %s897_s1 = inlined_call_operand.vmem [shape: f32[1,128], index: 1, kind: input, shape index: {}]   ;;  %s898_s2 = inlined_call_operand.vmem [shape: f32[1,128], index: 2, kind: input, shape index: {}]   ;;  %s899_s3 = inlined_call_operand.vmem [shape: f32[512,128], index: 3, kind: output, shape index: {}]  }
   0x1   :  { %v14_v0 = vld [vmem:[%s896_s0] sm:$0xff]  ;;  %v15_v4 = vld [vmem:[%s896_s0 + $0x8] sm:$0xff]  ;;  %v16_v5 = vld [vmem:[%s896_s0 + $0x10] sm:$0xff] }
   0x2   :  { %v380_v1 = vld [vmem:[%s897_s1] ss:$0 sm:$0xff]  ;;  %v17_v6 = vld [vmem:[%s896_s0 + $0x18] sm:$0xff]  ;;  %v19_v11 = vld [vmem:[%s896_s0 + $0x28] sm:$0xff] }
   0x3   :  { %v385_v2 = vld [vmem:[%s898_s2] ss:$0 sm:$0xff]  ;;  %v85_v3 = vmul.f32 %v380_v1, %v14_v0  ;;  %v86_v7 = vmul.f32 %v380_v1, %v15_v4  ;;  %v87_v8 = vmul.f32 %v380_v1, %v16_v5  ;;  %v88_v9 = vmul.f32 %v380_v1, %v17_v6  ;;  %v20_v12 = vld [vmem:[%s896_s0 + $0x30] sm:$0xff]  ;;  %v21_v17 = vld [vmem:[%s896_s0 + $0x38] sm:$0xff] }
   0x4   :  { %v18_v10 = vld [vmem:[%s896_s0 + $0x20] sm:$0xff]  ;;  %v90_v15 = vmul.f32 %v380_v1, %v19_v11  ;;  %v91_v16 = vmul.f32 %v380_v1, %v20_v12  ;;  %v92_v21 = vmul.f32 %v380_v1, %v21_v17  ;;  %v23_v27 = vld [vmem:[%s896_s0 + $0x48] sm:$0xff]  ;;  %v24_v28 = vld [vmem:[%s896_s0 + $0x50] sm:$0xff] }
   0x5   :  { %v156_v13 = vadd.f32 %v385_v2, %v85_v3  ;;  %v89_v14 = vmul.f32 %v380_v1, %v18_v10  ;;  %v157_v18 = vadd.f32 %v385_v2, %v86_v7  ;;  %v158_v19 = vadd.f32 %v385_v2, %v87_v8  ;;  %v22_v22 = vld [vmem:[%s896_s0 + $0x40] sm:$0xff]  ;;  %v25_v29 = vld [vmem:[%s896_s0 + $0x58] sm:$0xff]  ;;  %v27_v35 = vld [vmem:[%s896_s0 + $0x68] sm:$0xff] }
   0x6   :  { %v159_v20 = vadd.f32 %v385_v2, %v88_v9  ;;  %v161_v25 = vadd.f32 %v385_v2, %v90_v15  ;;  %v162_v26 = vadd.f32 %v385_v2, %v91_v16  ;;  %v163_v33 = vadd.f32 %v385_v2, %v92_v21  ;;  %v26_v34 = vld [vmem:[%s896_s0 + $0x60] sm:$0xff]  ;;  %v28_v36 = vld [vmem:[%s896_s0 + $0x70] sm:$0xff]  ;;  %v29_v41 = vld [vmem:[%s896_s0 + $0x78] sm:$0xff] }
   0x7   :  { %v220_v23 = vmax.f32 %v156_v13, 0.0  ;;  %v160_v24 = vadd.f32 %v385_v2, %v89_v14  ;;  %v221_v30 = vmax.f32 %v157_v18, 0.0  ;;  %v222_v31 = vmax.f32 %v158_v19, 0.0  ;;  %v30_v54 = vld [vmem:[%s896_s0 + $0x80] sm:$0xff]  ;;  %v31_v59 = vld [vmem:[%s896_s0 + $0x88] sm:$0xff]  ;;  %v32_v60 = vld [vmem:[%s896_s0 + $0x90] sm:$0xff] }
   0x8   :  { %v223_v32 = vmax.f32 %v159_v20, 0.0  ;;  %v225_v38 = vmax.f32 %v161_v25, 0.0  ;;  %v226_v39 = vmax.f32 %v162_v26, 0.0  ;;  %v93_v40 = vmul.f32 %v380_v1, %v22_v22  ;;  %v33_v61 = vld [vmem:[%s896_s0 + $0x98] sm:$0xff]  ;;  %v34_v4 = vld [vmem:[%s896_s0 + $0xa0] sm:$0xff]  ;;  %v35_v5 = vld [vmem:[%s896_s0 + $0xa8] sm:$0xff] }
   0x9   :  { %284 = vst [vmem:[%s899_s3] sm:$0xff] %v220_v23  ;;  %v224_v37 = vmax.f32 %v160_v24, 0.0  ;;  %285 = vst [vmem:[%s899_s3 + $0x8] sm:$0xff] %v221_v30  ;;  %v227_v42 = vmax.f32 %v163_v33, 0.0  ;;  %v94_v43 = vmul.f32 %v380_v1, %v23_v27  ;;  %v95_v44 = vmul.f32 %v380_v1, %v24_v28  ;;  %v36_v6 = vld [vmem:[%s896_s0 + $0xb0] sm:$0xff]  ;;  %v37_v11 = vld [vmem:[%s896_s0 + $0xb8] sm:$0xff] }
   0xa   :  { %286 = vst [vmem:[%s899_s3 + $0x10] sm:$0xff] %v222_v31  ;;  %287 = vst [vmem:[%s899_s3 + $0x18] sm:$0xff] %v223_v32  ;;  %v96_v45 = vmul.f32 %v380_v1, %v25_v29  ;;  %v164_v46 = vadd.f32 %v385_v2, %v93_v40  ;;  %v97_v47 = vmul.f32 %v380_v1, %v26_v34  ;;  %v38_v24 = vld [vmem:[%s896_s0 + $0xc0] sm:$0xff]  ;;  %v39_v29 = vld [vmem:[%s896_s0 + $0xc8] sm:$0xff] }
   0xb   :  { %288 = vst [vmem:[%s899_s3 + $0x20] sm:$0xff] %v224_v37  ;;  %289 = vst [vmem:[%s899_s3 + $0x28] sm:$0xff] %v225_v38  ;;  %v98_v48 = vmul.f32 %v380_v1, %v27_v35  ;;  %v99_v49 = vmul.f32 %v380_v1, %v28_v36  ;;  %v165_v50 = vadd.f32 %v385_v2, %v94_v43  ;;  %v40_v30 = vld [vmem:[%s896_s0 + $0xd0] sm:$0xff]  ;;  %v41_v31 = vld [vmem:[%s896_s0 + $0xd8] sm:$0xff] }
   0xc   :  { %290 = vst [vmem:[%s899_s3 + $0x30] sm:$0xff] %v226_v39  ;;  %291 = vst [vmem:[%s899_s3 + $0x38] sm:$0xff] %v227_v42  ;;  %v166_v51 = vadd.f32 %v385_v2, %v95_v44  ;;  %v167_v52 = vadd.f32 %v385_v2, %v96_v45  ;;  %v100_v53 = vmul.f32 %v380_v1, %v29_v41  ;;  %v228_v55 = vmax.f32 %v164_v46, 0.0  ;;  %v42_v36 = vld [vmem:[%s896_s0 + $0xe0] sm:$0xff]  ;;  %v43_v37 = vld [vmem:[%s896_s0 + $0xe8] sm:$0xff] }
   0xd   :  { %v168_v56 = vadd.f32 %v385_v2, %v97_v47  ;;  %v169_v57 = vadd.f32 %v385_v2, %v98_v48  ;;  %v170_v58 = vadd.f32 %v385_v2, %v99_v49  ;;  %v229_v62 = vmax.f32 %v165_v50, 0.0  ;;  %v44_v38 = vld [vmem:[%s896_s0 + $0xf0] sm:$0xff]  ;;  %v45_v43 = vld [vmem:[%s896_s0 + $0xf8] sm:$0xff] }
   0xe   :  { %v230_v63 = vmax.f32 %v166_v51, 0.0  ;;  %v231_v0 = vmax.f32 %v167_v52, 0.0  ;;  %v171_v3 = vadd.f32 %v385_v2, %v100_v53  ;;  %292 = vst [vmem:[%s899_s3 + $0x40] sm:$0xff] %v228_v55  ;;  %v101_v10 = vmul.f32 %v380_v1, %v30_v54 }
   0xf   :  { %v232_v7 = vmax.f32 %v168_v56, 0.0  ;;  %v233_v8 = vmax.f32 %v169_v57, 0.0  ;;  %v234_v9 = vmax.f32 %v170_v58, 0.0  ;;  %293 = vst [vmem:[%s899_s3 + $0x48] sm:$0xff] %v229_v62  ;;  %v102_v13 = vmul.f32 %v380_v1, %v31_v59  ;;  %v46_v56 = vld [vmem:[%s896_s0 + $0x100] sm:$0xff]  ;;  %v48_v62 = vld [vmem:[%s896_s0 + $0x110] sm:$0xff] }
  0x10   :  { %294 = vst [vmem:[%s899_s3 + $0x50] sm:$0xff] %v230_v63  ;;  %295 = vst [vmem:[%s899_s3 + $0x58] sm:$0xff] %v231_v0  ;;  %v235_v12 = vmax.f32 %v171_v3, 0.0  ;;  %v103_v14 = vmul.f32 %v380_v1, %v32_v60  ;;  %v104_v15 = vmul.f32 %v380_v1, %v33_v61  ;;  %v172_v16 = vadd.f32 %v385_v2, %v101_v10  ;;  %v47_v61 = vld [vmem:[%s896_s0 + $0x108] sm:$0xff]  ;;  %v49_v63 = vld [vmem:[%s896_s0 + $0x118] sm:$0xff] }
  0x11   :  { %296 = vst [vmem:[%s899_s3 + $0x60] sm:$0xff] %v232_v7  ;;  %297 = vst [vmem:[%s899_s3 + $0x68] sm:$0xff] %v233_v8  ;;  %v105_v17 = vmul.f32 %v380_v1, %v34_v4  ;;  %v106_v18 = vmul.f32 %v380_v1, %v35_v5  ;;  %v107_v19 = vmul.f32 %v380_v1, %v36_v6  ;;  %v50_v6 = vld [vmem:[%s896_s0 + $0x120] sm:$0xff]  ;;  %v51_v7 = vld [vmem:[%s896_s0 + $0x128] sm:$0xff] }
  0x12   :  { %298 = vst [vmem:[%s899_s3 + $0x70] sm:$0xff] %v234_v9  ;;  %299 = vst [vmem:[%s899_s3 + $0x78] sm:$0xff] %v235_v12  ;;  %v173_v20 = vadd.f32 %v385_v2, %v102_v13  ;;  %v174_v21 = vadd.f32 %v385_v2, %v103_v14  ;;  %v175_v22 = vadd.f32 %v385_v2, %v104_v15  ;;  %v236_v25 = vmax.f32 %v172_v16, 0.0  ;;  %v52_v8 = vld [vmem:[%s896_s0 + $0x130] sm:$0xff]  ;;  %v53_v13 = vld [vmem:[%s896_s0 + $0x138] sm:$0xff] }
  0x13   :  { %v108_v23 = vmul.f32 %v380_v1, %v37_v11  ;;  %v176_v26 = vadd.f32 %v385_v2, %v105_v17  ;;  %v177_v27 = vadd.f32 %v385_v2, %v106_v18  ;;  %v178_v28 = vadd.f32 %v385_v2, %v107_v19 }
  0x14   :  { %v237_v32 = vmax.f32 %v173_v20, 0.0  ;;  %v238_v33 = vmax.f32 %v174_v21, 0.0  ;;  %v239_v34 = vmax.f32 %v175_v22, 0.0  ;;  %300 = vst [vmem:[%s899_s3 + $0x80] sm:$0xff] %v236_v25  ;;  %v109_v42 = vmul.f32 %v380_v1, %v38_v24 }
  0x15   :  { %v179_v35 = vadd.f32 %v385_v2, %v108_v23  ;;  %v240_v39 = vmax.f32 %v176_v26, 0.0  ;;  %v241_v40 = vmax.f32 %v177_v27, 0.0  ;;  %v242_v41 = vmax.f32 %v178_v28, 0.0  ;;  %v54_v26 = vld [vmem:[%s896_s0 + $0x140] sm:$0xff] }
  0x16   :  { %301 = vst [vmem:[%s899_s3 + $0x88] sm:$0xff] %v237_v32  ;;  %302 = vst [vmem:[%s899_s3 + $0x90] sm:$0xff] %v238_v33  ;;  %v110_v45 = vmul.f32 %v380_v1, %v39_v29  ;;  %v111_v46 = vmul.f32 %v380_v1, %v40_v30  ;;  %v112_v47 = vmul.f32 %v380_v1, %v41_v31  ;;  %v55_v31 = vld [vmem:[%s896_s0 + $0x148] sm:$0xff]  ;;  %v56_v32 = vld [vmem:[%s896_s0 + $0x150] sm:$0xff] }
  0x17   :  { %303 = vst [vmem:[%s899_s3 + $0x98] sm:$0xff] %v239_v34  ;;  %v243_v44 = vmax.f32 %v179_v35, 0.0  ;;  %304 = vst [vmem:[%s899_s3 + $0xa0] sm:$0xff] %v240_v39  ;;  %v180_v48 = vadd.f32 %v385_v2, %v109_v42  ;;  %v113_v49 = vmul.f32 %v380_v1, %v42_v36  ;;  %v114_v50 = vmul.f32 %v380_v1, %v43_v37  ;;  %v57_v33 = vld [vmem:[%s896_s0 + $0x158] sm:$0xff]  ;;  %v59_v39 = vld [vmem:[%s896_s0 + $0x168] sm:$0xff] }
  0x18   :  { %305 = vst [vmem:[%s899_s3 + $0xa8] sm:$0xff] %v241_v40  ;;  %306 = vst [vmem:[%s899_s3 + $0xb0] sm:$0xff] %v242_v41  ;;  %v115_v51 = vmul.f32 %v380_v1, %v44_v38  ;;  %v181_v52 = vadd.f32 %v385_v2, %v110_v45  ;;  %v182_v53 = vadd.f32 %v385_v2, %v111_v46  ;;  %v58_v38 = vld [vmem:[%s896_s0 + $0x160] sm:$0xff]  ;;  %v60_v40 = vld [vmem:[%s896_s0 + $0x170] sm:$0xff] }
  0x19   :  { %307 = vst [vmem:[%s899_s3 + $0xb8] sm:$0xff] %v243_v44  ;;  %v183_v54 = vadd.f32 %v385_v2, %v112_v47  ;;  %v116_v55 = vmul.f32 %v380_v1, %v45_v43  ;;  %v244_v57 = vmax.f32 %v180_v48, 0.0  ;;  %v184_v58 = vadd.f32 %v385_v2, %v113_v49  ;;  %v61_v45 = vld [vmem:[%s896_s0 + $0x178] sm:$0xff] }
  0x1a   :  { %v185_v59 = vadd.f32 %v385_v2, %v114_v50  ;;  %v186_v60 = vadd.f32 %v385_v2, %v115_v51  ;;  %v245_v0 = vmax.f32 %v181_v52, 0.0  ;;  %v246_v3 = vmax.f32 %v182_v53, 0.0 }
  0x1b   :  { %v247_v4 = vmax.f32 %v183_v54, 0.0  ;;  %v187_v5 = vadd.f32 %v385_v2, %v116_v55  ;;  %308 = vst [vmem:[%s899_s3 + $0xc0] sm:$0xff] %v244_v57  ;;  %v248_v9 = vmax.f32 %v184_v58, 0.0  ;;  %v117_v12 = vmul.f32 %v380_v1, %v46_v56  ;;  %v62_v58 = vld [vmem:[%s896_s0 + $0x180] sm:$0xff] }
  0x1c   :  { %v249_v10 = vmax.f32 %v185_v59, 0.0  ;;  %v250_v11 = vmax.f32 %v186_v60, 0.0  ;;  %309 = vst [vmem:[%s899_s3 + $0xc8] sm:$0xff] %v245_v0  ;;  %310 = vst [vmem:[%s899_s3 + $0xd0] sm:$0xff] %v246_v3  ;;  %v118_v15 = vmul.f32 %v380_v1, %v47_v61  ;;  %v119_v16 = vmul.f32 %v380_v1, %v48_v62  ;;  %v64_v0 = vld [vmem:[%s896_s0 + $0x190] sm:$0xff]  ;;  %v65_v3 = vld [vmem:[%s896_s0 + $0x198] sm:$0xff] }
  0x1d   :  { %311 = vst [vmem:[%s899_s3 + $0xd8] sm:$0xff] %v247_v4  ;;  %v251_v14 = vmax.f32 %v187_v5, 0.0  ;;  %v120_v17 = vmul.f32 %v380_v1, %v49_v63  ;;  %312 = vst [vmem:[%s899_s3 + $0xe0] sm:$0xff] %v248_v9  ;;  %v188_v18 = vadd.f32 %v385_v2, %v117_v12  ;;  %v121_v19 = vmul.f32 %v380_v1, %v50_v6  ;;  %v63_v63 = vld [vmem:[%s896_s0 + $0x188] sm:$0xff] }
  0x1e   :  { %313 = vst [vmem:[%s899_s3 + $0xe8] sm:$0xff] %v249_v10  ;;  %314 = vst [vmem:[%s899_s3 + $0xf0] sm:$0xff] %v250_v11  ;;  %v122_v20 = vmul.f32 %v380_v1, %v51_v7  ;;  %v123_v21 = vmul.f32 %v380_v1, %v52_v8  ;;  %v189_v22 = vadd.f32 %v385_v2, %v118_v15  ;;  %v66_v8 = vld [vmem:[%s896_s0 + $0x1a0] sm:$0xff]  ;;  %v67_v9 = vld [vmem:[%s896_s0 + $0x1a8] sm:$0xff] }
  0x1f   :  { %315 = vst [vmem:[%s899_s3 + $0xf8] sm:$0xff] %v251_v14  ;;  %v190_v23 = vadd.f32 %v385_v2, %v119_v16  ;;  %v191_v24 = vadd.f32 %v385_v2, %v120_v17  ;;  %v124_v25 = vmul.f32 %v380_v1, %v53_v13  ;;  %v252_v27 = vmax.f32 %v188_v18, 0.0  ;;  %v68_v10 = vld [vmem:[%s896_s0 + $0x1b0] sm:$0xff]  ;;  %v69_v15 = vld [vmem:[%s896_s0 + $0x1b8] sm:$0xff] }
  0x20   :  { %v192_v28 = vadd.f32 %v385_v2, %v121_v19  ;;  %v193_v29 = vadd.f32 %v385_v2, %v122_v20  ;;  %v194_v30 = vadd.f32 %v385_v2, %v123_v21  ;;  %v253_v34 = vmax.f32 %v189_v22, 0.0 }
  0x21   :  { %v254_v35 = vmax.f32 %v190_v23, 0.0  ;;  %v255_v36 = vmax.f32 %v191_v24, 0.0  ;;  %v195_v37 = vadd.f32 %v385_v2, %v124_v25  ;;  %316 = vst [vmem:[%s899_s3 + $0x100] sm:$0xff] %v252_v27  ;;  %v125_v44 = vmul.f32 %v380_v1, %v54_v26 }
  0x22   :  { %v256_v41 = vmax.f32 %v192_v28, 0.0  ;;  %v257_v42 = vmax.f32 %v193_v29, 0.0  ;;  %v258_v43 = vmax.f32 %v194_v30, 0.0  ;;  %317 = vst [vmem:[%s899_s3 + $0x108] sm:$0xff] %v253_v34  ;;  %v126_v47 = vmul.f32 %v380_v1, %v55_v31  ;;  %v70_v28 = vld [vmem:[%s896_s0 + $0x1c0] sm:$0xff]  ;;  %v72_v34 = vld [vmem:[%s896_s0 + $0x1d0] sm:$0xff] }
  0x23   :  { %318 = vst [vmem:[%s899_s3 + $0x110] sm:$0xff] %v254_v35  ;;  %319 = vst [vmem:[%s899_s3 + $0x118] sm:$0xff] %v255_v36  ;;  %v259_v46 = vmax.f32 %v195_v37, 0.0  ;;  %v127_v48 = vmul.f32 %v380_v1, %v56_v32  ;;  %v128_v49 = vmul.f32 %v380_v1, %v57_v33  ;;  %v196_v50 = vadd.f32 %v385_v2, %v125_v44  ;;  %v71_v33 = vld [vmem:[%s896_s0 + $0x1c8] sm:$0xff]  ;;  %v73_v35 = vld [vmem:[%s896_s0 + $0x1d8] sm:$0xff] }
  0x24   :  { %320 = vst [vmem:[%s899_s3 + $0x120] sm:$0xff] %v256_v41  ;;  %321 = vst [vmem:[%s899_s3 + $0x128] sm:$0xff] %v257_v42  ;;  %v129_v51 = vmul.f32 %v380_v1, %v58_v38  ;;  %v130_v52 = vmul.f32 %v380_v1, %v59_v39  ;;  %v131_v53 = vmul.f32 %v380_v1, %v60_v40  ;;  %v74_v40 = vld [vmem:[%s896_s0 + $0x1e0] sm:$0xff]  ;;  %v75_v41 = vld [vmem:[%s896_s0 + $0x1e8] sm:$0xff] }
  0x25   :  { %322 = vst [vmem:[%s899_s3 + $0x130] sm:$0xff] %v258_v43  ;;  %323 = vst [vmem:[%s899_s3 + $0x138] sm:$0xff] %v259_v46  ;;  %v197_v54 = vadd.f32 %v385_v2, %v126_v47  ;;  %v198_v55 = vadd.f32 %v385_v2, %v127_v48  ;;  %v199_v56 = vadd.f32 %v385_v2, %v128_v49  ;;  %v260_v59 = vmax.f32 %v196_v50, 0.0  ;;  %v76_v42 = vld [vmem:[%s896_s0 + $0x1f0] sm:$0xff]  ;;  %v77_v47 = vld [vmem:[%s896_s0 + $0x1f8] sm:$0xff] }
  0x26   :  { %v132_v57 = vmul.f32 %v380_v1, %v61_v45  ;;  %v200_v60 = vadd.f32 %v385_v2, %v129_v51  ;;  %v201_v61 = vadd.f32 %v385_v2, %v130_v52  ;;  %v202_v62 = vadd.f32 %v385_v2, %v131_v53 }
  0x27   :  { %v261_v4 = vmax.f32 %v197_v54, 0.0  ;;  %v262_v5 = vmax.f32 %v198_v55, 0.0  ;;  %v263_v6 = vmax.f32 %v199_v56, 0.0  ;;  %324 = vst [vmem:[%s899_s3 + $0x140] sm:$0xff] %v260_v59  ;;  %v133_v14 = vmul.f32 %v380_v1, %v62_v58 }
  0x28   :  { %v203_v7 = vadd.f32 %v385_v2, %v132_v57  ;;  %v264_v11 = vmax.f32 %v200_v60, 0.0  ;;  %v265_v12 = vmax.f32 %v201_v61, 0.0  ;;  %v266_v13 = vmax.f32 %v202_v62, 0.0 }
  0x29   :  { %325 = vst [vmem:[%s899_s3 + $0x148] sm:$0xff] %v261_v4  ;;  %326 = vst [vmem:[%s899_s3 + $0x150] sm:$0xff] %v262_v5  ;;  %v134_v17 = vmul.f32 %v380_v1, %v63_v63  ;;  %v135_v18 = vmul.f32 %v380_v1, %v64_v0  ;;  %v136_v19 = vmul.f32 %v380_v1, %v65_v3 }
  0x2a   :  { %327 = vst [vmem:[%s899_s3 + $0x158] sm:$0xff] %v263_v6  ;;  %v267_v16 = vmax.f32 %v203_v7, 0.0  ;;  %328 = vst [vmem:[%s899_s3 + $0x160] sm:$0xff] %v264_v11  ;;  %v204_v20 = vadd.f32 %v385_v2, %v133_v14  ;;  %v137_v21 = vmul.f32 %v380_v1, %v66_v8  ;;  %v138_v22 = vmul.f32 %v380_v1, %v67_v9 }
  0x2b   :  { %329 = vst [vmem:[%s899_s3 + $0x168] sm:$0xff] %v265_v12  ;;  %330 = vst [vmem:[%s899_s3 + $0x170] sm:$0xff] %v266_v13  ;;  %v139_v23 = vmul.f32 %v380_v1, %v68_v10  ;;  %v205_v24 = vadd.f32 %v385_v2, %v134_v17  ;;  %v206_v25 = vadd.f32 %v385_v2, %v135_v18 }
  0x2c   :  { %331 = vst [vmem:[%s899_s3 + $0x178] sm:$0xff] %v267_v16  ;;  %v207_v26 = vadd.f32 %v385_v2, %v136_v19  ;;  %v140_v27 = vmul.f32 %v380_v1, %v69_v15  ;;  %v268_v29 = vmax.f32 %v204_v20, 0.0  ;;  %v208_v30 = vadd.f32 %v385_v2, %v137_v21 }
  0x2d   :  { %v209_v31 = vadd.f32 %v385_v2, %v138_v22  ;;  %v210_v32 = vadd.f32 %v385_v2, %v139_v23  ;;  %v269_v36 = vmax.f32 %v205_v24, 0.0  ;;  %v270_v37 = vmax.f32 %v206_v25, 0.0 }
  0x2e   :  { %v271_v38 = vmax.f32 %v207_v26, 0.0  ;;  %v211_v39 = vadd.f32 %v385_v2, %v140_v27  ;;  %332 = vst [vmem:[%s899_s3 + $0x180] sm:$0xff] %v268_v29  ;;  %v272_v43 = vmax.f32 %v208_v30, 0.0  ;;  %v141_v46 = vmul.f32 %v380_v1, %v70_v28 }
  0x2f   :  { %v273_v44 = vmax.f32 %v209_v31, 0.0  ;;  %v274_v45 = vmax.f32 %v210_v32, 0.0  ;;  %333 = vst [vmem:[%s899_s3 + $0x188] sm:$0xff] %v269_v36  ;;  %334 = vst [vmem:[%s899_s3 + $0x190] sm:$0xff] %v270_v37  ;;  %v142_v49 = vmul.f32 %v380_v1, %v71_v33  ;;  %v143_v50 = vmul.f32 %v380_v1, %v72_v34 }
  0x30   :  { %335 = vst [vmem:[%s899_s3 + $0x198] sm:$0xff] %v271_v38  ;;  %v275_v48 = vmax.f32 %v211_v39, 0.0  ;;  %v144_v51 = vmul.f32 %v380_v1, %v73_v35  ;;  %336 = vst [vmem:[%s899_s3 + $0x1a0] sm:$0xff] %v272_v43  ;;  %v212_v52 = vadd.f32 %v385_v2, %v141_v46  ;;  %v145_v53 = vmul.f32 %v380_v1, %v74_v40 }
  0x31   :  { %337 = vst [vmem:[%s899_s3 + $0x1a8] sm:$0xff] %v273_v44  ;;  %338 = vst [vmem:[%s899_s3 + $0x1b0] sm:$0xff] %v274_v45  ;;  %v146_v54 = vmul.f32 %v380_v1, %v75_v41  ;;  %v147_v55 = vmul.f32 %v380_v1, %v76_v42  ;;  %v213_v56 = vadd.f32 %v385_v2, %v142_v49 }
  0x32   :  { %339 = vst [vmem:[%s899_s3 + $0x1b8] sm:$0xff] %v275_v48  ;;  %v214_v57 = vadd.f32 %v385_v2, %v143_v50  ;;  %v215_v58 = vadd.f32 %v385_v2, %v144_v51  ;;  %v148_v59 = vmul.f32 %v380_v1, %v77_v47  ;;  %v276_v60 = vmax.f32 %v212_v52, 0.0 }
  0x33   :  { %v216_v61 = vadd.f32 %v385_v2, %v145_v53  ;;  %v217_v62 = vadd.f32 %v385_v2, %v146_v54  ;;  %v218_v63 = vadd.f32 %v385_v2, %v147_v55  ;;  %v277_v0 = vmax.f32 %v213_v56, 0.0 }
  0x34   :  { %v278_v3 = vmax.f32 %v214_v57, 0.0  ;;  %v279_v4 = vmax.f32 %v215_v58, 0.0  ;;  %v219_v5 = vadd.f32 %v385_v2, %v148_v59  ;;  %340 = vst [vmem:[%s899_s3 + $0x1c0] sm:$0xff] %v276_v60 }
  0x35   :  { %v280_v6 = vmax.f32 %v216_v61, 0.0  ;;  %v281_v7 = vmax.f32 %v217_v62, 0.0  ;;  %v282_v8 = vmax.f32 %v218_v63, 0.0  ;;  %341 = vst [vmem:[%s899_s3 + $0x1c8] sm:$0xff] %v277_v0 }
  0x36   :  { %342 = vst [vmem:[%s899_s3 + $0x1d0] sm:$0xff] %v278_v3  ;;  %343 = vst [vmem:[%s899_s3 + $0x1d8] sm:$0xff] %v279_v4  ;;  %v283_v1 = vmax.f32 %v219_v5, 0.0 }
  0x37   :  { %344 = vst [vmem:[%s899_s3 + $0x1e0] sm:$0xff] %v280_v6  ;;  %345 = vst [vmem:[%s899_s3 + $0x1e8] sm:$0xff] %v281_v7 }
  0x38   :  { %346 = vst [vmem:[%s899_s3 + $0x1f0] sm:$0xff] %v282_v8  ;;  %347 = vst [vmem:[%s899_s3 + $0x1f8] sm:$0xff] %v283_v1 }

// kernel: bottleneck_forward.8
= control target key start
LH: loop header
LB: loop body
LE: loop exit
PB: predicated region body
PF: predicated region fallthrough
CT: control target
= control target key end

     0   :  { %s1356_s15 = smov 0   ;;  %s1358_s16 = smov 0   ;;  %s1558_s0 = inlined_call_operand.vmem [shape: bf16[512,128], index: 0, kind: input, shape index: {}]   ;;  %s1559_s1 = inlined_call_operand.vmem [shape: bf16[128,128], index: 1, kind: input, shape index: {}]   ;;  %s1560_s2 = inlined_call_operand.vmem [shape: f32[512,128], index: 2, kind: output, shape index: {0}]   ;;  %s1561_s3 = inlined_call_operand.vmem [shape: f32[2,1,128], index: 3, kind: output, shape index: {1}]   ;;  %s1562_s4 = inlined_call_operand.vmem [shape: f32[2,1,128], index: 4, kind: output, shape index: {2}]  }
   0x1   :  { %s1360_s17 = smov 0  }
   0x2 LB: > { %s34_s18 = sadd.s32 1, %s1325_s16  ;;  %p1140_p0 = scmp.ge.s32.totalorder %s1329_s17, 1  ;;  %s1329_s17 = sphi %s1360_s17, %s15_s17   ;;  %s1325_s16 = sphi %s1358_s16, %s1564_s16   ;;  %s1321_s15 = sphi %s1356_s15, %s1563_s15  }
   0x3   : > { %p36_p1 = scmp.ge.s32.totalorder %s34_s18, 2  ;;  %p214_p2 = scmp.lt.s32.totalorder %s1329_s17, 3 }
   0x5   : > { %s1566_s18 = smov (%p36_p1, %s34_s18), 0  ;;  %p215_p3 = pnand %p1140_p0, %p214_p2 }
   0x6   : > { %v1283_v0 = vld [vmem:[%s1559_s1] sm:$0xff] (!%p215_p3)   ;;  %s1141_s21 = sshll.u32 (!%p215_p3), %s1321_s15, 5  ;;  %v1284_v1 = vld [vmem:[%s1559_s1 + $0x8] sm:$0xff] (!%p215_p3)   ;;  %v1285_v2 = vld [vmem:[%s1559_s1 + $0x10] sm:$0xff] (!%p215_p3)   ;;  %p293_p5 = scmp.lt.s32.totalorder (!%p215_p3), %s1321_s15, 1 }
   0x7   : > { %218 = sbr.rel (%p215_p3) target bundleno = 331 (0x14b), region = 28  ;;  %p267_p4 = scmp.lt.s32.totalorder (!%p215_p3), %s1141_s21, 63  ;;  %1195 = vmatprep.subr.bf16.mxu0 (!%p215_p3), %v1283_v0  ;;  %1243 = vmatprep.subr.bf16.mxu1 (!%p215_p3), %v1283_v0  ;;  %v1286_v3 = vld [vmem:[%s1559_s1 + $0x18] sm:$0xff] (!%p215_p3)   ;;  %v1287_v5 = vld [vmem:[%s1559_s1 + $0x20] sm:$0xff] (!%p215_p3)   ;;  %v1288_v6 = vld [vmem:[%s1559_s1 + $0x28] sm:$0xff] (!%p215_p3)  }
   0x8   : > { %1196 = vmatpush3.bf16.msra.mxu0 (!%p215_p3), %v1283_v0  ;;  %1251 = vmatpush3.bf16.msra.mxu1 (!%p215_p3), %v1283_v0  ;;  %v1289_v8 = vld [vmem:[%s1559_s1 + $0x30] sm:$0xff] (!%p215_p3)   ;;  %v1290_v9 = vld [vmem:[%s1559_s1 + $0x38] sm:$0xff] (!%p215_p3)  }
   0x9   : > { %1197 = vmatprep.subr.bf16.mxu0 (!%p215_p3), %v1284_v1  ;;  %1244 = vmatprep.subr.bf16.mxu1 (!%p215_p3), %v1284_v1 }
   0xc   : > { %1198 = vmatpush3.bf16.msra.mxu0 (!%p215_p3), %v1284_v1  ;;  %1252 = vmatpush3.bf16.msra.mxu1 (!%p215_p3), %v1284_v1 }
   0xd   : > { %1199 = vmatprep.subr.bf16.mxu0 (!%p215_p3), %v1285_v2  ;;  %1245 = vmatprep.subr.bf16.mxu1 (!%p215_p3), %v1285_v2 }
   0xe   : > { %s1568_s21 = smov (!%p267_p4, %s1141_s21), 63  ;;  %s1570_s15 = smov (!%p293_p5, %s1321_s15), 1 }
   0xf   : > { %s1142_s26 = sshll.u32 %s1568_s21, 2  ;;  %s1144_s14 = sshll.u32 %s1568_s21, 3 }
  0x10   : > { %s1392_s29 = scalar_lea.vmem %s1558_s0, %s1142_s26  ;;  %1200 = vmatpush3.bf16.msra.mxu0 %v1285_v2  ;;  %1253 = vmatpush3.bf16.msra.mxu1 %v1285_v2  ;;  %s1429_s22 = scalar_lea.vmem %s1560_s2, %s1144_s14 }
  0x11   : > { %v1291_v4 = vld [vmem:[%s1392_s29] sm:$0xff]   ;;  %1201 = vmatprep.subr.bf16.mxu0 %v1286_v3  ;;  %1246 = vmatprep.subr.bf16.mxu1 %v1286_v3  ;;  %v1292_v10 = vld [vmem:[%s1392_s29 + $0x8] sm:$0xff]   ;;  %v1293_v12 = vld [vmem:[%s1392_s29 + $0x10] sm:$0xff]   ;;  %s298_s24 = scalar_lea.vmem %s1561_s3, %s1570_s15  ;;  %s304_s27 = scalar_lea.vmem %s1562_s4, %s1570_s15 }
  0x12   : > { %1211 = vmatprep.mubr.bf16.mxu0 %v1291_v4  ;;  %v1299_v7 = vld [vmem:[%s1392_s29 + $0x40] sm:$0xff]   ;;  %v1300_v11 = vld [vmem:[%s1392_s29 + $0x48] sm:$0xff]   ;;  %v1301_v13 = vld [vmem:[%s1392_s29 + $0x50] sm:$0xff]  }
  0x13   : > { %1227 = vmatprep.mubr.bf16.mxu1 %v1299_v7  ;;  %v1294_v14 = vld [vmem:[%s1392_s29 + $0x18] sm:$0xff]   ;;  %v1295_v16 = vld [vmem:[%s1392_s29 + $0x20] sm:$0xff]   ;;  %v1296_v18 = vld [vmem:[%s1392_s29 + $0x28] sm:$0xff]  }
  0x14   : > { %1202 = vmatpush3.bf16.msra.mxu0 %v1286_v3  ;;  %1254 = vmatpush3.bf16.msra.mxu1 %v1286_v3  ;;  %v1302_v15 = vld [vmem:[%s1392_s29 + $0x58] sm:$0xff]   ;;  %v1303_v17 = vld [vmem:[%s1392_s29 + $0x60] sm:$0xff]   ;;  %v1304_v19 = vld [vmem:[%s1392_s29 + $0x68] sm:$0xff]  }
  0x15   : > { %1203 = vmatprep.subr.bf16.mxu0 %v1287_v5  ;;  %1247 = vmatprep.subr.bf16.mxu1 %v1287_v5  ;;  %v1297_v20 = vld [vmem:[%s1392_s29 + $0x30] sm:$0xff]   ;;  %v1298_v22 = vld [vmem:[%s1392_s29 + $0x38] sm:$0xff]  }
  0x16   : > { %v1305_v21 = vld [vmem:[%s1392_s29 + $0x70] sm:$0xff]   ;;  %v1306_v23 = vld [vmem:[%s1392_s29 + $0x78] sm:$0xff]  }
  0x18   : > { %1204 = vmatpush3.bf16.msra.mxu0 %v1287_v5  ;;  %1255 = vmatpush3.bf16.msra.mxu1 %v1287_v5 }
  0x19   : > { %1205 = vmatprep.subr.bf16.mxu0 %v1288_v6  ;;  %1248 = vmatprep.subr.bf16.mxu1 %v1288_v6 }
  0x1c   : > { %1206 = vmatpush3.bf16.msra.mxu0 %v1288_v6  ;;  %1256 = vmatpush3.bf16.msra.mxu1 %v1288_v6 }
  0x1d   : > { %1207 = vmatprep.subr.bf16.mxu0 %v1289_v8  ;;  %1249 = vmatprep.subr.bf16.mxu1 %v1289_v8 }
  0x20   : > { %1208 = vmatpush3.bf16.msra.mxu0 %v1289_v8  ;;  %1257 = vmatpush3.bf16.msra.mxu1 %v1289_v8 }
  0x21   : > { %1209 = vmatprep.subr.bf16.mxu0 %v1290_v9  ;;  %1250 = vmatprep.subr.bf16.mxu1 %v1290_v9 }
  0x24   : > { %1210 = vmatpush3.bf16.msra.mxu0 %v1290_v9  ;;  %1258 = vmatpush3.bf16.msra.mxu1 %v1290_v9 }
  0x27   : > { %1212 = vmatmul.mubr.bf16.vlgmr.msra.gmra.mrb[0].mxu0 %v1292_v10  ;;  %1228 = vmatmul.mubr.bf16.vlgmr.msra.gmra.mrb[0].mxu1 %v1300_v11 }
  0x28   : > { %1215 = vmatprep.mubr.bf16.mxu0 %v1293_v12  ;;  %1231 = vmatprep.mubr.bf16.mxu1 %v1301_v13 }
  0x2f   : > { %1216 = vmatmul.mubr.bf16.gmra.mrb[4].mxu0 %v1294_v14  ;;  %1232 = vmatmul.mubr.bf16.gmra.mrb[4].mxu1 %v1302_v15 }
  0x30   : > { %1219 = vmatprep.mubr.bf16.mxu0 %v1295_v16  ;;  %1235 = vmatprep.mubr.bf16.mxu1 %v1303_v17 }
  0x37   : > { %1220 = vmatmul.mubr.bf16.gmra.mrb[8].mxu0 %v1296_v18  ;;  %1236 = vmatmul.mubr.bf16.gmra.mrb[8].mxu1 %v1304_v19 }
  0x38   : > { %1223 = vmatprep.mubr.bf16.mxu0 %v1297_v20  ;;  %1239 = vmatprep.mubr.bf16.mxu1 %v1305_v21 }
  0x3f   : > { %1224 = vmatmul.mubr.bf16.gmra.mrb[12].mxu0 %v1298_v22  ;;  %1240 = vmatmul.mubr.bf16.gmra.mrb[12].mxu1 %v1306_v23 }
  0xfa   : > { %v1213_v24 = vpop.f32.mrb[0].mxu0  ;;  %v1431_v25 = vpop.f32.mrb[0].mxu1 }
  0xfb   : > { %828 = vst [vmem:[%s1429_s22 + $0x10] sm:$0xff] %v1213_v24  ;;  %v600_v26 = vpop.f32.mrb[1].mxu0  ;;  %844 = vst [vmem:[%s1429_s22 + $0x90] sm:$0xff] %v1431_v25  ;;  %v1436_v27 = vpop.f32.mrb[1].mxu1  ;;  %v897_v35 = vmul.f32 %v1213_v24, %v1213_v24 }
  0xfc   : > { %826 = vst [vmem:[%s1429_s22] sm:$0xff] %v600_v26  ;;  %v1214_v28 = vpop.f32.mrb[2].mxu0  ;;  %842 = vst [vmem:[%s1429_s22 + $0x80] sm:$0xff] %v1436_v27  ;;  %v1441_v29 = vpop.f32.mrb[2].mxu1  ;;  %v895_v32 = vmul.f32 %v600_v26, %v600_v26 }
  0xfd   : > { %829 = vst [vmem:[%s1429_s22 + $0x18] sm:$0xff] %v1214_v28  ;;  %v603_v30 = vpop.f32.mrb[3].mxu0  ;;  %845 = vst [vmem:[%s1429_s22 + $0x98] sm:$0xff] %v1441_v29  ;;  %v1446_v31 = vpop.f32.mrb[3].mxu1  ;;  %v898_v38 = vmul.f32 %v1214_v28, %v1214_v28 }
  0xfe   : > { %827 = vst [vmem:[%s1429_s22 + $0x8] sm:$0xff] %v603_v30  ;;  %v858_v33 = vadd.f32 %v603_v30, %v600_v26  ;;  %v896_v34 = vmul.f32 %v603_v30, %v603_v30  ;;  %843 = vst [vmem:[%s1429_s22 + $0x88] sm:$0xff] %v1446_v31 }
 0x100   : > { %v859_v36 = vadd.f32 %v1213_v24, %v858_v33  ;;  %v927_v37 = vadd.f32 %v896_v34, %v895_v32 }
 0x102   : > { %v928_v39 = vadd.f32 %v927_v37, %v897_v35  ;;  %v1217_v40 = vpop.f32.mrb[4].mxu0  ;;  %v860_v41 = vadd.f32 %v1214_v28, %v859_v36  ;;  %v1451_v42 = vpop.f32.mrb[4].mxu1 }
 0x103   : > { %832 = vst [vmem:[%s1429_s22 + $0x30] sm:$0xff] %v1217_v40  ;;  %v616_v43 = vpop.f32.mrb[5].mxu0  ;;  %848 = vst [vmem:[%s1429_s22 + $0xb0] sm:$0xff] %v1451_v42  ;;  %v1456_v44 = vpop.f32.mrb[5].mxu1  ;;  %v901_v55 = vmul.f32 %v1217_v40, %v1217_v40 }
 0x104   : > { %830 = vst [vmem:[%s1429_s22 + $0x20] sm:$0xff] %v616_v43  ;;  %v861_v45 = vadd.f32 %v860_v41, %v616_v43  ;;  %v899_v46 = vmul.f32 %v616_v43, %v616_v43  ;;  %v929_v47 = vadd.f32 %v928_v39, %v898_v38  ;;  %v1218_v48 = vpop.f32.mrb[6].mxu0  ;;  %846 = vst [vmem:[%s1429_s22 + $0xa0] sm:$0xff] %v1456_v44  ;;  %v1461_v49 = vpop.f32.mrb[6].mxu1 }
 0x105   : > { %833 = vst [vmem:[%s1429_s22 + $0x38] sm:$0xff] %v1218_v48  ;;  %v619_v50 = vpop.f32.mrb[7].mxu0  ;;  %849 = vst [vmem:[%s1429_s22 + $0xb8] sm:$0xff] %v1461_v49  ;;  %v1466_v51 = vpop.f32.mrb[7].mxu1  ;;  %v902_v58 = vmul.f32 %v1218_v48, %v1218_v48  ;;  %v911_v41 = vmul.f32 %v1436_v27, %v1436_v27 }
 0x106   : > { %v930_v52 = vadd.f32 %v929_v47, %v899_v46  ;;  %831 = vst [vmem:[%s1429_s22 + $0x28] sm:$0xff] %v619_v50  ;;  %v862_v53 = vadd.f32 %v861_v45, %v619_v50  ;;  %v900_v54 = vmul.f32 %v619_v50, %v619_v50  ;;  %847 = vst [vmem:[%s1429_s22 + $0xa8] sm:$0xff] %v1466_v51 }
 0x107   : > { %v913_v50 = vmul.f32 %v1431_v25, %v1431_v25 }
 0x108   : > { %v863_v56 = vadd.f32 %v1217_v40, %v862_v53  ;;  %v931_v57 = vadd.f32 %v930_v52, %v900_v54  ;;  %v914_v54 = vmul.f32 %v1441_v29, %v1441_v29 }
 0x10a   : > { %v932_v59 = vadd.f32 %v931_v57, %v901_v55  ;;  %v1221_v60 = vpop.f32.mrb[8].mxu0  ;;  %v864_v61 = vadd.f32 %v1218_v48, %v863_v56  ;;  %v1471_v62 = vpop.f32.mrb[8].mxu1  ;;  %v912_v48 = vmul.f32 %v1446_v31, %v1446_v31 }
 0x10b   : > { %836 = vst [vmem:[%s1429_s22 + $0x50] sm:$0xff] %v1221_v60  ;;  %v632_v63 = vpop.f32.mrb[9].mxu0  ;;  %852 = vst [vmem:[%s1429_s22 + $0xd0] sm:$0xff] %v1471_v62  ;;  %v1476_v0 = vpop.f32.mrb[9].mxu1  ;;  %v905_v11 = vmul.f32 %v1221_v60, %v1221_v60 }
 0x10c   : > { %834 = vst [vmem:[%s1429_s22 + $0x40] sm:$0xff] %v632_v63  ;;  %v865_v1 = vadd.f32 %v864_v61, %v632_v63  ;;  %v903_v2 = vmul.f32 %v632_v63, %v632_v63  ;;  %v933_v3 = vadd.f32 %v932_v59, %v902_v58  ;;  %v1222_v4 = vpop.f32.mrb[10].mxu0  ;;  %850 = vst [vmem:[%s1429_s22 + $0xc0] sm:$0xff] %v1476_v0  ;;  %v1481_v5 = vpop.f32.mrb[10].mxu1 }
 0x10d   : > { %837 = vst [vmem:[%s1429_s22 + $0x58] sm:$0xff] %v1222_v4  ;;  %v635_v6 = vpop.f32.mrb[11].mxu0  ;;  %853 = vst [vmem:[%s1429_s22 + $0xd8] sm:$0xff] %v1481_v5  ;;  %v1486_v7 = vpop.f32.mrb[11].mxu1  ;;  %v906_v14 = vmul.f32 %v1222_v4, %v1222_v4 }
 0x10e   : > { %v934_v8 = vadd.f32 %v933_v3, %v903_v2  ;;  %835 = vst [vmem:[%s1429_s22 + $0x48] sm:$0xff] %v635_v6  ;;  %v866_v9 = vadd.f32 %v865_v1, %v635_v6  ;;  %v904_v10 = vmul.f32 %v635_v6, %v635_v6  ;;  %851 = vst [vmem:[%s1429_s22 + $0xc8] sm:$0xff] %v1486_v7 }
 0x110   : > { %v867_v12 = vadd.f32 %v1221_v60, %v866_v9  ;;  %v935_v13 = vadd.f32 %v934_v8, %v904_v10  ;;  %v916_v60 = vmul.f32 %v1466_v51, %v1466_v51  ;;  %v920_v8 = vmul.f32 %v1486_v7, %v1486_v7 }
 0x112   : > { %v936_v15 = vadd.f32 %v935_v13, %v905_v11  ;;  %v1225_v16 = vpop.f32.mrb[12].mxu0  ;;  %v868_v17 = vadd.f32 %v1222_v4, %v867_v12  ;;  %v1491_v18 = vpop.f32.mrb[12].mxu1 }
 0x113   : > { %840 = vst [vmem:[%s1429_s22 + $0x70] sm:$0xff] %v1225_v16  ;;  %v648_v19 = vpop.f32.mrb[13].mxu0  ;;  %856 = vst [vmem:[%s1429_s22 + $0xf0] sm:$0xff] %v1491_v18  ;;  %v712_v20 = vpop.f32.mrb[13].mxu1  ;;  %v909_v35 = vmul.f32 %v1225_v16, %v1225_v16 }
 0x114   : > { %838 = vst [vmem:[%s1429_s22 + $0x60] sm:$0xff] %v648_v19  ;;  %v869_v21 = vadd.f32 %v868_v17, %v648_v19  ;;  %v907_v22 = vmul.f32 %v648_v19, %v648_v19  ;;  %v937_v23 = vadd.f32 %v936_v15, %v906_v14  ;;  %v1226_v24 = vpop.f32.mrb[14].mxu0  ;;  %854 = vst [vmem:[%s1429_s22 + $0xe0] sm:$0xff] %v712_v20  ;;  %v1242_v26 = vpop.f32.mrb[14].mxu1 }
 0x115   : > { %841 = vst [vmem:[%s1429_s22 + $0x78] sm:$0xff] %v1226_v24  ;;  %v651_v28 = vpop.f32.mrb[15].mxu0  ;;  %857 = vst [vmem:[%s1429_s22 + $0xf8] sm:$0xff] %v1242_v26  ;;  %v715_v30 = vpop.f32.mrb[15].mxu1  ;;  %v910_v38 = vmul.f32 %v1226_v24, %v1226_v24  ;;  %v923_v12 = vmul.f32 %v712_v20, %v712_v20  ;;  %v925_v17 = vmul.f32 %v1491_v18, %v1491_v18 }
 0x116   : > { %v938_v32 = vadd.f32 %v937_v23, %v907_v22  ;;  %839 = vst [vmem:[%s1429_s22 + $0x68] sm:$0xff] %v651_v28  ;;  %v870_v33 = vadd.f32 %v869_v21, %v651_v28  ;;  %v908_v34 = vmul.f32 %v651_v28, %v651_v28  ;;  %855 = vst [vmem:[%s1429_s22 + $0xe8] sm:$0xff] %v715_v30 }
 0x117   : > { %v926_v21 = vmul.f32 %v1242_v26, %v1242_v26 }
 0x118   : > { %v871_v36 = vadd.f32 %v1225_v16, %v870_v33  ;;  %v939_v37 = vadd.f32 %v938_v32, %v908_v34 }
 0x11a   : > { %v940_v39 = vadd.f32 %v939_v37, %v909_v35  ;;  %v872_v40 = vadd.f32 %v1226_v24, %v871_v36 }
 0x11c   : > { %v873_v43 = vadd.f32 %v872_v40, %v1436_v27  ;;  %v941_v45 = vadd.f32 %v940_v39, %v910_v38  ;;  %v915_v27 = vmul.f32 %v1456_v44, %v1456_v44 }
 0x11e   : > { %v942_v46 = vadd.f32 %v941_v45, %v911_v41  ;;  %v874_v47 = vadd.f32 %v873_v43, %v1446_v31 }
 0x120   : > { %v875_v52 = vadd.f32 %v1431_v25, %v874_v47  ;;  %v943_v53 = vadd.f32 %v942_v46, %v912_v48  ;;  %v917_v25 = vmul.f32 %v1451_v42, %v1451_v42 }
 0x122   : > { %v944_v55 = vadd.f32 %v943_v53, %v913_v50  ;;  %v876_v56 = vadd.f32 %v1441_v29, %v875_v52  ;;  %v918_v29 = vmul.f32 %v1461_v49, %v1461_v49 }
 0x124   : > { %v877_v57 = vadd.f32 %v876_v56, %v1456_v44  ;;  %v945_v58 = vadd.f32 %v944_v55, %v914_v54  ;;  %v919_v44 = vmul.f32 %v1476_v0, %v1476_v0 }
 0x126   : > { %v946_v59 = vadd.f32 %v945_v58, %v915_v27  ;;  %v878_v31 = vadd.f32 %v877_v57, %v1466_v51 }
 0x128   : > { %v879_v61 = vadd.f32 %v1451_v42, %v878_v31  ;;  %v947_v63 = vadd.f32 %v946_v59, %v916_v60  ;;  %v921_v42 = vmul.f32 %v1471_v62, %v1471_v62 }
 0x12a   : > { %v948_v1 = vadd.f32 %v947_v63, %v917_v25  ;;  %v880_v2 = vadd.f32 %v1461_v49, %v879_v61  ;;  %v922_v49 = vmul.f32 %v1481_v5, %v1481_v5 }
 0x12c   : > { %v881_v3 = vadd.f32 %v880_v2, %v1476_v0  ;;  %v949_v4 = vadd.f32 %v948_v1, %v918_v29 }
 0x12e   : > { %v950_v6 = vadd.f32 %v949_v4, %v919_v44  ;;  %v882_v51 = vadd.f32 %v881_v3, %v1486_v7  ;;  %v924_v7 = vmul.f32 %v715_v30, %v715_v30 }
 0x130   : > { %v883_v9 = vadd.f32 %v1471_v62, %v882_v51  ;;  %v951_v10 = vadd.f32 %v950_v6, %v920_v8 }
 0x132   : > { %v952_v11 = vadd.f32 %v951_v10, %v921_v42  ;;  %v884_v0 = vadd.f32 %v1481_v5, %v883_v9 }
 0x134   : > { %v885_v13 = vadd.f32 %v884_v0, %v712_v20  ;;  %v953_v14 = vadd.f32 %v952_v11, %v922_v49 }
 0x136   : > { %v954_v15 = vadd.f32 %v953_v14, %v923_v12  ;;  %v886_v16 = vadd.f32 %v885_v13, %v715_v30 }
 0x138   : > { %v887_v62 = vadd.f32 %v1491_v18, %v886_v16  ;;  %v955_v19 = vadd.f32 %v954_v15, %v924_v7 }
 0x13a   : > { %v888_v22 = vadd.f32 %v1242_v26, %v887_v62  ;;  %v956_v23 = vadd.f32 %v955_v19, %v925_v17 }
 0x13c   : > { %v889_v24 = vrot.slane %v888_v22, 4  ;;  %v957_v28 = vadd.f32 %v956_v23, %v926_v21 }
 0x13e   : > { %v890_v5 = vadd.f32 %v889_v24, %v888_v22  ;;  %v958_v32 = vrot.slane %v957_v28, 4 }
 0x140   : > { %v891_v20 = vrot.slane %v890_v5, 2  ;;  %v959_v33 = vadd.f32 %v958_v32, %v957_v28 }
 0x142   : > { %v892_v34 = vadd.f32 %v891_v20, %v890_v5  ;;  %v960_v35 = vrot.slane %v959_v33, 2 }
 0x144   : > { %v893_v30 = vrot.slane %v892_v34, 1  ;;  %v961_v36 = vadd.f32 %v960_v35, %v959_v33 }
 0x146   : > { %v894_v18 = vadd.f32 %v893_v30, %v892_v34  ;;  %v962_v37 = vrot.slane %v961_v36, 1 }
 0x148   : > { %v963_v26 = vadd.f32 %v962_v37, %v961_v36  ;;  %964 = vst [vmem:[%s298_s24] sm:$0x1] %v894_v18 }
 0x14a   : > { %965 = vst [vmem:[%s304_s27] sm:$0x1] %v963_v26 }
 0x14b PF: > { %s15_s17 = sadd.s32 1, %s1329_s17   ;;  %s1563_s15 = smov %s1325_s16 }
 0x14c   : > { %p12_p6 = scmp.ge.s32.totalorder %s15_s17, 4   ;;  %s1564_s16 = smov %s1566_s18 }
 0x14e   :  { %14 = sbr.rel (!%p12_p6) target bundleno = 2 (0x2), region = 93 }

// kernel: bottleneck_forward.11
= control target key start
LH: loop header
LB: loop body
LE: loop exit
PB: predicated region body
PF: predicated region fallthrough
CT: control target
= control target key end

     0   :  { %s254_s0 = inlined_call_operand.vmem [shape: f32[128,128], index: 0, kind: input, shape index: {}]   ;;  %s255_s1 = inlined_call_operand.vmem [shape: f32[1,128], index: 1, kind: input, shape index: {}]   ;;  %s256_s2 = inlined_call_operand.vmem [shape: f32[1,128], index: 2, kind: input, shape index: {}]   ;;  %s257_s3 = inlined_call_operand.vmem [shape: f32[128,128], index: 3, kind: output, shape index: {}]  }
   0x1   :  { %v14_v0 = vld [vmem:[%s254_s0] sm:$0xff]  ;;  %v15_v4 = vld [vmem:[%s254_s0 + $0x8] sm:$0xff]  ;;  %v16_v5 = vld [vmem:[%s254_s0 + $0x10] sm:$0xff] }
   0x2   :  { %v112_v1 = vld [vmem:[%s255_s1] ss:$0 sm:$0xff]  ;;  %v17_v6 = vld [vmem:[%s254_s0 + $0x18] sm:$0xff]  ;;  %v19_v11 = vld [vmem:[%s254_s0 + $0x28] sm:$0xff] }
   0x3   :  { %v143_v2 = vld [vmem:[%s256_s2] ss:$0 sm:$0xff]  ;;  %v37_v3 = vmul.f32 %v112_v1, %v14_v0  ;;  %v38_v7 = vmul.f32 %v112_v1, %v15_v4  ;;  %v39_v8 = vmul.f32 %v112_v1, %v16_v5  ;;  %v40_v9 = vmul.f32 %v112_v1, %v17_v6  ;;  %v20_v12 = vld [vmem:[%s254_s0 + $0x30] sm:$0xff]  ;;  %v21_v17 = vld [vmem:[%s254_s0 + $0x38] sm:$0xff] }
   0x4   :  { %v18_v10 = vld [vmem:[%s254_s0 + $0x20] sm:$0xff]  ;;  %v42_v15 = vmul.f32 %v112_v1, %v19_v11  ;;  %v43_v16 = vmul.f32 %v112_v1, %v20_v12  ;;  %v44_v21 = vmul.f32 %v112_v1, %v21_v17  ;;  %v23_v27 = vld [vmem:[%s254_s0 + $0x48] sm:$0xff]  ;;  %v24_v28 = vld [vmem:[%s254_s0 + $0x50] sm:$0xff] }
   0x5   :  { %v60_v13 = vadd.f32 %v143_v2, %v37_v3  ;;  %v41_v14 = vmul.f32 %v112_v1, %v18_v10  ;;  %v61_v18 = vadd.f32 %v143_v2, %v38_v7  ;;  %v62_v19 = vadd.f32 %v143_v2, %v39_v8  ;;  %v22_v22 = vld [vmem:[%s254_s0 + $0x40] sm:$0xff]  ;;  %v25_v29 = vld [vmem:[%s254_s0 + $0x58] sm:$0xff]  ;;  %v27_v35 = vld [vmem:[%s254_s0 + $0x68] sm:$0xff] }
   0x6   :  { %v63_v20 = vadd.f32 %v143_v2, %v40_v9  ;;  %v65_v25 = vadd.f32 %v143_v2, %v42_v15  ;;  %v66_v26 = vadd.f32 %v143_v2, %v43_v16  ;;  %v67_v33 = vadd.f32 %v143_v2, %v44_v21  ;;  %v26_v34 = vld [vmem:[%s254_s0 + $0x60] sm:$0xff]  ;;  %v28_v36 = vld [vmem:[%s254_s0 + $0x70] sm:$0xff]  ;;  %v29_v41 = vld [vmem:[%s254_s0 + $0x78] sm:$0xff] }
   0x7   :  { %v76_v23 = vmax.f32 %v60_v13, 0.0  ;;  %v64_v24 = vadd.f32 %v143_v2, %v41_v14  ;;  %v77_v30 = vmax.f32 %v61_v18, 0.0  ;;  %v78_v31 = vmax.f32 %v62_v19, 0.0 }
   0x8   :  { %v79_v32 = vmax.f32 %v63_v20, 0.0  ;;  %v81_v38 = vmax.f32 %v65_v25, 0.0  ;;  %v82_v39 = vmax.f32 %v66_v26, 0.0  ;;  %v45_v40 = vmul.f32 %v112_v1, %v22_v22 }
   0x9   :  { %92 = vst [vmem:[%s257_s3] sm:$0xff] %v76_v23  ;;  %v80_v37 = vmax.f32 %v64_v24, 0.0  ;;  %93 = vst [vmem:[%s257_s3 + $0x8] sm:$0xff] %v77_v30  ;;  %v83_v42 = vmax.f32 %v67_v33, 0.0  ;;  %v46_v43 = vmul.f32 %v112_v1, %v23_v27  ;;  %v47_v44 = vmul.f32 %v112_v1, %v24_v28 }
   0xa   :  { %94 = vst [vmem:[%s257_s3 + $0x10] sm:$0xff] %v78_v31  ;;  %95 = vst [vmem:[%s257_s3 + $0x18] sm:$0xff] %v79_v32  ;;  %v48_v45 = vmul.f32 %v112_v1, %v25_v29  ;;  %v68_v46 = vadd.f32 %v143_v2, %v45_v40  ;;  %v49_v47 = vmul.f32 %v112_v1, %v26_v34 }
   0xb   :  { %96 = vst [vmem:[%s257_s3 + $0x20] sm:$0xff] %v80_v37  ;;  %97 = vst [vmem:[%s257_s3 + $0x28] sm:$0xff] %v81_v38  ;;  %v50_v48 = vmul.f32 %v112_v1, %v27_v35  ;;  %v51_v49 = vmul.f32 %v112_v1, %v28_v36  ;;  %v69_v50 = vadd.f32 %v143_v2, %v46_v43 }
   0xc   :  { %98 = vst [vmem:[%s257_s3 + $0x30] sm:$0xff] %v82_v39  ;;  %99 = vst [vmem:[%s257_s3 + $0x38] sm:$0xff] %v83_v42  ;;  %v70_v51 = vadd.f32 %v143_v2, %v47_v44  ;;  %v71_v52 = vadd.f32 %v143_v2, %v48_v45  ;;  %v52_v53 = vmul.f32 %v112_v1, %v29_v41  ;;  %v84_v54 = vmax.f32 %v68_v46, 0.0 }
   0xd   :  { %v72_v55 = vadd.f32 %v143_v2, %v49_v47  ;;  %v73_v56 = vadd.f32 %v143_v2, %v50_v48  ;;  %v74_v57 = vadd.f32 %v143_v2, %v51_v49  ;;  %v85_v58 = vmax.f32 %v69_v50, 0.0 }
   0xe   :  { %v86_v59 = vmax.f32 %v70_v51, 0.0  ;;  %v87_v60 = vmax.f32 %v71_v52, 0.0  ;;  %v75_v61 = vadd.f32 %v143_v2, %v52_v53  ;;  %100 = vst [vmem:[%s257_s3 + $0x40] sm:$0xff] %v84_v54 }
   0xf   :  { %v88_v62 = vmax.f32 %v72_v55, 0.0  ;;  %v89_v63 = vmax.f32 %v73_v56, 0.0  ;;  %v90_v0 = vmax.f32 %v74_v57, 0.0  ;;  %101 = vst [vmem:[%s257_s3 + $0x48] sm:$0xff] %v85_v58 }
  0x10   :  { %102 = vst [vmem:[%s257_s3 + $0x50] sm:$0xff] %v86_v59  ;;  %103 = vst [vmem:[%s257_s3 + $0x58] sm:$0xff] %v87_v60  ;;  %v91_v1 = vmax.f32 %v75_v61, 0.0 }
  0x11   :  { %104 = vst [vmem:[%s257_s3 + $0x60] sm:$0xff] %v88_v62  ;;  %105 = vst [vmem:[%s257_s3 + $0x68] sm:$0xff] %v89_v63 }
  0x12   :  { %106 = vst [vmem:[%s257_s3 + $0x70] sm:$0xff] %v90_v0  ;;  %107 = vst [vmem:[%s257_s3 + $0x78] sm:$0xff] %v91_v1 }

// kernel: bottleneck_forward.10
= control target key start
LH: loop header
LB: loop body
LE: loop exit
PB: predicated region body
PF: predicated region fallthrough
CT: control target
= control target key end

     0   :  { %s856_s1 = inlined_call_operand.vmem [shape: bf16[256,128], index: 1, kind: input, shape index: {}]   ;;  %s857_s0 = inlined_call_operand.vmem [shape: bf16[128,256], index: 0, kind: input, shape index: {}]   ;;  %s858_s2 = inlined_call_operand.vmem [shape: f32[128,128], index: 2, kind: output, shape index: {0}]   ;;  %s859_s3 = inlined_call_operand.vmem [shape: f32[1,1,128], index: 3, kind: output, shape index: {1}]   ;;  %s860_s4 = inlined_call_operand.vmem [shape: f32[1,1,128], index: 4, kind: output, shape index: {2}]  }
   0x1   :  { %v623_v0 = vld [vmem:[%s856_s1 + $0x40] sm:$0xff]   ;;  %v625_v2 = vld [vmem:[%s856_s1 + $0x48] sm:$0xff]   ;;  %v627_v4 = vld [vmem:[%s856_s1 + $0x50] sm:$0xff]  }
   0x2   :  { %v624_v1 = vld [vmem:[%s856_s1] sm:$0xff]   ;;  %543 = vmatprep.subr.bf16.mxu0 %v623_v0  ;;  %607 = vmatprep.subr.bf16.mxu1 %v623_v0  ;;  %v626_v3 = vld [vmem:[%s856_s1 + $0x8] sm:$0xff]   ;;  %v628_v5 = vld [vmem:[%s856_s1 + $0x10] sm:$0xff]  }
   0x3   :  { %544 = vmatpush3.bf16.msra.mxu0 %v624_v1  ;;  %615 = vmatpush3.bf16.msra.mxu1 %v624_v1  ;;  %v629_v6 = vld [vmem:[%s856_s1 + $0x58] sm:$0xff]   ;;  %v631_v8 = vld [vmem:[%s856_s1 + $0x60] sm:$0xff]   ;;  %v633_v10 = vld [vmem:[%s856_s1 + $0x68] sm:$0xff]  }
   0x4   :  { %545 = vmatprep.subr.bf16.mxu0 %v625_v2  ;;  %608 = vmatprep.subr.bf16.mxu1 %v625_v2  ;;  %v630_v7 = vld [vmem:[%s856_s1 + $0x18] sm:$0xff]   ;;  %v632_v9 = vld [vmem:[%s856_s1 + $0x20] sm:$0xff]   ;;  %v634_v12 = vld [vmem:[%s856_s1 + $0x28] sm:$0xff]  }
   0x5   :  { %v641_v11 = vld [vmem:[%s857_s0 + $0x4] ss:$8 sps:$4 sm:$0xff]   ;;  %v635_v14 = vld [vmem:[%s856_s1 + $0x70] sm:$0xff]   ;;  %v637_v16 = vld [vmem:[%s856_s1 + $0x78] sm:$0xff]  }
   0x6   :  { %v647_v13 = vld [vmem:[%s857_s0 + $0x44] ss:$8 sps:$4 sm:$0xff]   ;;  %307 = vmatprep.mubr.bf16.mxu0 %v641_v11  ;;  %v636_v15 = vld [vmem:[%s856_s1 + $0x30] sm:$0xff]   ;;  %v638_v17 = vld [vmem:[%s856_s1 + $0x38] sm:$0xff]  }
   0x7   :  { %546 = vmatpush3.bf16.msra.mxu0 %v626_v3  ;;  %616 = vmatpush3.bf16.msra.mxu1 %v626_v3  ;;  %v639_v18 = vld [vmem:[%s857_s0] ss:$8 sps:$4 sm:$0xff]   ;;  %v642_v20 = vld [vmem:[%s857_s0 + $0x14] ss:$8 sps:$4 sm:$0xff]   ;;  %v644_v22 = vld [vmem:[%s857_s0 + $0x10] ss:$8 sps:$4 sm:$0xff]  }
   0x8   :  { %547 = vmatprep.subr.bf16.mxu0 %v627_v4  ;;  %609 = vmatprep.subr.bf16.mxu1 %v627_v4  ;;  %v645_v19 = vld [vmem:[%s857_s0 + $0x40] ss:$8 sps:$4 sm:$0xff]   ;;  %v651_v21 = vld [vmem:[%s857_s0 + $0x54] ss:$8 sps:$4 sm:$0xff]   ;;  %v653_v23 = vld [vmem:[%s857_s0 + $0x50] ss:$8 sps:$4 sm:$0xff]  }
   0x9   :  { %339 = vmatprep.mubr.bf16.mxu1 %v647_v13  ;;  %v648_v24 = vld [vmem:[%s857_s0 + $0x24] ss:$8 sps:$4 sm:$0xff]   ;;  %v650_v26 = vld [vmem:[%s857_s0 + $0x20] ss:$8 sps:$4 sm:$0xff]   ;;  %v654_v28 = vld [vmem:[%s857_s0 + $0x34] ss:$8 sps:$4 sm:$0xff]  }
   0xa   :  { %v657_v25 = vld [vmem:[%s857_s0 + $0x64] ss:$8 sps:$4 sm:$0xff]   ;;  %v659_v27 = vld [vmem:[%s857_s0 + $0x60] ss:$8 sps:$4 sm:$0xff]   ;;  %v660_v29 = vld [vmem:[%s857_s0 + $0x74] ss:$8 sps:$4 sm:$0xff]  }
   0xb   :  { %548 = vmatpush3.bf16.msra.mxu0 %v628_v5  ;;  %617 = vmatpush3.bf16.msra.mxu1 %v628_v5  ;;  %v656_v30 = vld [vmem:[%s857_s0 + $0x30] ss:$8 sps:$4 sm:$0xff]  }
   0xc   :  { %549 = vmatprep.subr.bf16.mxu0 %v629_v6  ;;  %610 = vmatprep.subr.bf16.mxu1 %v629_v6  ;;  %v662_v31 = vld [vmem:[%s857_s0 + $0x70] ss:$8 sps:$4 sm:$0xff]  }
   0xf   :  { %550 = vmatpush3.bf16.msra.mxu0 %v630_v7  ;;  %618 = vmatpush3.bf16.msra.mxu1 %v630_v7 }
  0x10   :  { %551 = vmatprep.subr.bf16.mxu0 %v631_v8  ;;  %611 = vmatprep.subr.bf16.mxu1 %v631_v8 }
  0x13   :  { %552 = vmatpush3.bf16.msra.mxu0 %v632_v9  ;;  %619 = vmatpush3.bf16.msra.mxu1 %v632_v9 }
  0x14   :  { %553 = vmatprep.subr.bf16.mxu0 %v633_v10  ;;  %612 = vmatprep.subr.bf16.mxu1 %v633_v10 }
  0x17   :  { %554 = vmatpush3.bf16.msra.mxu0 %v634_v12  ;;  %620 = vmatpush3.bf16.msra.mxu1 %v634_v12 }
  0x18   :  { %555 = vmatprep.subr.bf16.mxu0 %v635_v14  ;;  %613 = vmatprep.subr.bf16.mxu1 %v635_v14 }
  0x1b   :  { %556 = vmatpush3.bf16.msra.mxu0 %v636_v15  ;;  %621 = vmatpush3.bf16.msra.mxu1 %v636_v15 }
  0x1c   :  { %557 = vmatprep.subr.bf16.mxu0 %v637_v16  ;;  %614 = vmatprep.subr.bf16.mxu1 %v637_v16 }
  0x1f   :  { %558 = vmatpush3.bf16.msra.mxu0 %v638_v17  ;;  %622 = vmatpush3.bf16.msra.mxu1 %v638_v17 }
  0x22   :  { %308 = vmatmul.mubr.bf16.vlgmr.msra.gmra.mrb[0].mxu0 %v639_v18  ;;  %340 = vmatmul.mubr.bf16.vlgmr.msra.gmra.mrb[0].mxu1 %v645_v19 }
  0x23   :  { %315 = vmatprep.mubr.bf16.mxu0 %v642_v20  ;;  %347 = vmatprep.mubr.bf16.mxu1 %v651_v21 }
  0x2a   :  { %316 = vmatmul.mubr.bf16.gmra.mrb[4].mxu0 %v644_v22  ;;  %348 = vmatmul.mubr.bf16.gmra.mrb[4].mxu1 %v653_v23 }
  0x2b   :  { %323 = vmatprep.mubr.bf16.mxu0 %v648_v24  ;;  %355 = vmatprep.mubr.bf16.mxu1 %v657_v25 }
  0x32   :  { %324 = vmatmul.mubr.bf16.gmra.mrb[8].mxu0 %v650_v26  ;;  %356 = vmatmul.mubr.bf16.gmra.mrb[8].mxu1 %v659_v27 }
  0x33   :  { %331 = vmatprep.mubr.bf16.mxu0 %v654_v28  ;;  %363 = vmatprep.mubr.bf16.mxu1 %v660_v29 }
  0x3a   :  { %332 = vmatmul.mubr.bf16.gmra.mrb[12].mxu0 %v656_v30  ;;  %364 = vmatmul.mubr.bf16.gmra.mrb[12].mxu1 %v662_v31 }
  0xf5   :  { %v559_v32 = vpop.f32.mrb[0].mxu0  ;;  %v583_v33 = vpop.f32.mrb[0].mxu1 }
  0xf6   :  { %v560_v34 = vpop.f32.mrb[1].mxu0  ;;  %v584_v35 = vpop.f32.mrb[1].mxu1 }
  0xf7   :  { %v561_v36 = vadd.f32 %v560_v34, %v559_v32  ;;  %v562_v37 = vpop.f32.mrb[2].mxu0  ;;  %v784_v38 = vadd.f32 %v584_v35, %v583_v33  ;;  %v586_v39 = vpop.f32.mrb[2].mxu1 }
  0xf8   :  { %v563_v40 = vpop.f32.mrb[3].mxu0  ;;  %v587_v41 = vpop.f32.mrb[3].mxu1 }
  0xf9   :  { %423 = vst [vmem:[%s858_s2] sm:$0xff] %v561_v36  ;;  %v564_v42 = vadd.f32 %v563_v40, %v562_v37  ;;  %431 = vst [vmem:[%s858_s2 + $0x40] sm:$0xff] %v784_v38  ;;  %v793_v43 = vadd.f32 %v587_v41, %v586_v39  ;;  %v460_v44 = vmul.f32 %v561_v36, %v561_v36 }
  0xfa   :  { %v468_v37 = vmul.f32 %v784_v38, %v784_v38 }
  0xfb   :  { %424 = vst [vmem:[%s858_s2 + $0x8] sm:$0xff] %v564_v42  ;;  %v439_v45 = vadd.f32 %v564_v42, %v561_v36  ;;  %v461_v46 = vmul.f32 %v564_v42, %v564_v42  ;;  %432 = vst [vmem:[%s858_s2 + $0x48] sm:$0xff] %v793_v43  ;;  %v469_v41 = vmul.f32 %v793_v43, %v793_v43 }
  0xfd   :  { %v476_v47 = vadd.f32 %v461_v46, %v460_v44  ;;  %v565_v48 = vpop.f32.mrb[4].mxu0  ;;  %v589_v49 = vpop.f32.mrb[4].mxu1 }
  0xfe   :  { %v566_v50 = vpop.f32.mrb[5].mxu0  ;;  %v590_v51 = vpop.f32.mrb[5].mxu1 }
  0xff   :  { %v567_v52 = vadd.f32 %v566_v50, %v565_v48  ;;  %v568_v53 = vpop.f32.mrb[6].mxu0  ;;  %v802_v54 = vadd.f32 %v590_v51, %v589_v49  ;;  %v592_v55 = vpop.f32.mrb[6].mxu1 }
 0x100   :  { %v569_v56 = vpop.f32.mrb[7].mxu0  ;;  %v593_v57 = vpop.f32.mrb[7].mxu1 }
 0x101   :  { %425 = vst [vmem:[%s858_s2 + $0x10] sm:$0xff] %v567_v52  ;;  %v440_v58 = vadd.f32 %v567_v52, %v439_v45  ;;  %v462_v59 = vmul.f32 %v567_v52, %v567_v52  ;;  %v570_v60 = vadd.f32 %v569_v56, %v568_v53  ;;  %433 = vst [vmem:[%s858_s2 + $0x50] sm:$0xff] %v802_v54 }
 0x102   :  { %v594_v61 = vadd.f32 %v593_v57, %v592_v55  ;;  %v470_v45 = vmul.f32 %v802_v54, %v802_v54 }
 0x103   :  { %v477_v62 = vadd.f32 %v476_v47, %v462_v59  ;;  %426 = vst [vmem:[%s858_s2 + $0x18] sm:$0xff] %v570_v60  ;;  %v441_v63 = vadd.f32 %v570_v60, %v440_v58  ;;  %v463_v0 = vmul.f32 %v570_v60, %v570_v60 }
 0x104   :  { %434 = vst [vmem:[%s858_s2 + $0x58] sm:$0xff] %v594_v61  ;;  %v471_v48 = vmul.f32 %v594_v61, %v594_v61 }
 0x105   :  { %v478_v1 = vadd.f32 %v477_v62, %v463_v0  ;;  %v571_v2 = vpop.f32.mrb[8].mxu0  ;;  %v595_v3 = vpop.f32.mrb[8].mxu1 }
 0x106   :  { %v572_v4 = vpop.f32.mrb[9].mxu0  ;;  %v596_v5 = vpop.f32.mrb[9].mxu1 }
 0x107   :  { %v573_v6 = vadd.f32 %v572_v4, %v571_v2  ;;  %v574_v7 = vpop.f32.mrb[10].mxu0  ;;  %v597_v8 = vadd.f32 %v596_v5, %v595_v3  ;;  %v598_v9 = vpop.f32.mrb[10].mxu1 }
 0x108   :  { %v575_v10 = vpop.f32.mrb[11].mxu0  ;;  %v599_v11 = vpop.f32.mrb[11].mxu1 }
 0x109   :  { %427 = vst [vmem:[%s858_s2 + $0x20] sm:$0xff] %v573_v6  ;;  %v442_v12 = vadd.f32 %v573_v6, %v441_v63  ;;  %v464_v13 = vmul.f32 %v573_v6, %v573_v6  ;;  %v576_v14 = vadd.f32 %v575_v10, %v574_v7  ;;  %435 = vst [vmem:[%s858_s2 + $0x60] sm:$0xff] %v597_v8 }
 0x10a   :  { %v600_v15 = vadd.f32 %v599_v11, %v598_v9  ;;  %v472_v52 = vmul.f32 %v597_v8, %v597_v8 }
 0x10b   :  { %v479_v16 = vadd.f32 %v478_v1, %v464_v13  ;;  %428 = vst [vmem:[%s858_s2 + $0x28] sm:$0xff] %v576_v14  ;;  %v443_v17 = vadd.f32 %v576_v14, %v442_v12  ;;  %v465_v18 = vmul.f32 %v576_v14, %v576_v14 }
 0x10c   :  { %436 = vst [vmem:[%s858_s2 + $0x68] sm:$0xff] %v600_v15  ;;  %v473_v56 = vmul.f32 %v600_v15, %v600_v15 }
 0x10d   :  { %v480_v19 = vadd.f32 %v479_v16, %v465_v18  ;;  %v577_v20 = vpop.f32.mrb[12].mxu0  ;;  %v601_v21 = vpop.f32.mrb[12].mxu1 }
 0x10e   :  { %v578_v22 = vpop.f32.mrb[13].mxu0  ;;  %v602_v23 = vpop.f32.mrb[13].mxu1 }
 0x10f   :  { %v579_v24 = vadd.f32 %v578_v22, %v577_v20  ;;  %v580_v25 = vpop.f32.mrb[14].mxu0  ;;  %v603_v26 = vadd.f32 %v602_v23, %v601_v21  ;;  %v604_v27 = vpop.f32.mrb[14].mxu1 }
 0x110   :  { %v581_v28 = vpop.f32.mrb[15].mxu0  ;;  %v605_v29 = vpop.f32.mrb[15].mxu1 }
 0x111   :  { %429 = vst [vmem:[%s858_s2 + $0x30] sm:$0xff] %v579_v24  ;;  %v444_v30 = vadd.f32 %v579_v24, %v443_v17  ;;  %v466_v31 = vmul.f32 %v579_v24, %v579_v24  ;;  %v582_v32 = vadd.f32 %v581_v28, %v580_v25  ;;  %437 = vst [vmem:[%s858_s2 + $0x70] sm:$0xff] %v603_v26 }
 0x112   :  { %v606_v33 = vadd.f32 %v605_v29, %v604_v27  ;;  %v474_v57 = vmul.f32 %v603_v26, %v603_v26 }
 0x113   :  { %v481_v34 = vadd.f32 %v480_v19, %v466_v31  ;;  %430 = vst [vmem:[%s858_s2 + $0x38] sm:$0xff] %v582_v32  ;;  %v445_v35 = vadd.f32 %v582_v32, %v444_v30  ;;  %v467_v36 = vmul.f32 %v582_v32, %v582_v32 }
 0x114   :  { %438 = vst [vmem:[%s858_s2 + $0x78] sm:$0xff] %v606_v33  ;;  %v475_v62 = vmul.f32 %v606_v33, %v606_v33 }
 0x115   :  { %v446_v39 = vadd.f32 %v784_v38, %v445_v35  ;;  %v482_v40 = vadd.f32 %v481_v34, %v467_v36 }
 0x117   :  { %v447_v42 = vadd.f32 %v793_v43, %v446_v39  ;;  %v483_v44 = vadd.f32 %v482_v40, %v468_v37 }
 0x119   :  { %v484_v46 = vadd.f32 %v483_v44, %v469_v41  ;;  %v448_v47 = vadd.f32 %v802_v54, %v447_v42 }
 0x11b   :  { %v449_v49 = vadd.f32 %v594_v61, %v448_v47  ;;  %v485_v50 = vadd.f32 %v484_v46, %v470_v45 }
 0x11d   :  { %v450_v51 = vadd.f32 %v597_v8, %v449_v49  ;;  %v486_v53 = vadd.f32 %v485_v50, %v471_v48 }
 0x11f   :  { %v487_v38 = vadd.f32 %v486_v53, %v472_v52  ;;  %v451_v55 = vadd.f32 %v600_v15, %v450_v51 }
 0x121   :  { %v488_v58 = vadd.f32 %v487_v38, %v473_v56  ;;  %v452_v59 = vadd.f32 %v603_v26, %v451_v55 }
 0x123   :  { %v489_v43 = vadd.f32 %v488_v58, %v474_v57  ;;  %v453_v60 = vadd.f32 %v606_v33, %v452_v59 }
 0x125   :  { %v454_v63 = vrot.slane %v453_v60, 4  ;;  %v490_v0 = vadd.f32 %v489_v43, %v475_v62 }
 0x127   :  { %v455_v1 = vadd.f32 %v454_v63, %v453_v60  ;;  %v491_v2 = vrot.slane %v490_v0, 4 }
 0x129   :  { %v456_v54 = vrot.slane %v455_v1, 2  ;;  %v492_v3 = vadd.f32 %v491_v2, %v490_v0 }
 0x12b   :  { %v457_v61 = vadd.f32 %v456_v54, %v455_v1  ;;  %v493_v4 = vrot.slane %v492_v3, 2 }
 0x12d   :  { %v458_v5 = vrot.slane %v457_v61, 1  ;;  %v494_v6 = vadd.f32 %v493_v4, %v492_v3 }
 0x12f   :  { %v459_v7 = vadd.f32 %v458_v5, %v457_v61  ;;  %v495_v8 = vrot.slane %v494_v6, 1 }
 0x131   :  { %v496_v9 = vadd.f32 %v495_v8, %v494_v6  ;;  %497 = vst [vmem:[%s859_s3] sm:$0x1] %v459_v7 }
 0x133   :  { %498 = vst [vmem:[%s860_s4] sm:$0x1] %v496_v9 }

// kernel: bottleneck_forward.14
= control target key start
LH: loop header
LB: loop body
LE: loop exit
PB: predicated region body
PF: predicated region fallthrough
CT: control target
= control target key end

     0   :  { %s638_s1 = inlined_call_operand.vmem [shape: bf16[128,128], index: 1, kind: input, shape index: {}]   ;;  %s639_s0 = inlined_call_operand.vmem [shape: bf16[128,128], index: 0, kind: input, shape index: {}]   ;;  %s640_s2 = inlined_call_operand.vmem [shape: f32[128,128], index: 2, kind: output, shape index: {0}]   ;;  %s641_s3 = inlined_call_operand.vmem [shape: f32[1,1,128], index: 3, kind: output, shape index: {1}]   ;;  %s642_s4 = inlined_call_operand.vmem [shape: f32[1,1,128], index: 4, kind: output, shape index: {2}]  }
   0x1   :  { %v495_v0 = vld [vmem:[%s638_s1] sm:$0xff]   ;;  %v496_v1 = vld [vmem:[%s638_s1 + $0x8] sm:$0xff]   ;;  %v497_v2 = vld [vmem:[%s638_s1 + $0x10] sm:$0xff]  }
   0x2   :  { %447 = vmatprep.subr.bf16.mxu0 %v495_v0  ;;  %479 = vmatprep.subr.bf16.mxu1 %v495_v0  ;;  %v498_v3 = vld [vmem:[%s638_s1 + $0x18] sm:$0xff]   ;;  %v503_v4 = vld [vmem:[%s639_s0] sm:$0xff]   ;;  %v500_v7 = vld [vmem:[%s638_s1 + $0x28] sm:$0xff]  }
   0x3   :  { %448 = vmatpush3.bf16.msra.mxu0 %v495_v0  ;;  %487 = vmatpush3.bf16.msra.mxu1 %v495_v0  ;;  %v499_v5 = vld [vmem:[%s638_s1 + $0x20] sm:$0xff]   ;;  %v501_v8 = vld [vmem:[%s638_s1 + $0x30] sm:$0xff]   ;;  %v502_v9 = vld [vmem:[%s638_s1 + $0x38] sm:$0xff]  }
   0x4   :  { %449 = vmatprep.subr.bf16.mxu0 %v496_v1  ;;  %480 = vmatprep.subr.bf16.mxu1 %v496_v1  ;;  %v507_v6 = vld [vmem:[%s639_s0 + $0x20] sm:$0xff]   ;;  %v504_v10 = vld [vmem:[%s639_s0 + $0x8] sm:$0xff]   ;;  %v505_v12 = vld [vmem:[%s639_s0 + $0x10] sm:$0xff]  }
   0x5   :  { %463 = vmatprep.mubr.bf16.mxu0 %v503_v4  ;;  %471 = vmatprep.mubr.bf16.mxu1 %v507_v6  ;;  %v508_v11 = vld [vmem:[%s639_s0 + $0x28] sm:$0xff]   ;;  %v509_v13 = vld [vmem:[%s639_s0 + $0x30] sm:$0xff]   ;;  %v506_v14 = vld [vmem:[%s639_s0 + $0x18] sm:$0xff]  }
   0x6   :  { %v510_v15 = vld [vmem:[%s639_s0 + $0x38] sm:$0xff]  }
   0x7   :  { %450 = vmatpush3.bf16.msra.mxu0 %v496_v1  ;;  %488 = vmatpush3.bf16.msra.mxu1 %v496_v1 }
   0x8   :  { %451 = vmatprep.subr.bf16.mxu0 %v497_v2  ;;  %481 = vmatprep.subr.bf16.mxu1 %v497_v2 }
   0xb   :  { %452 = vmatpush3.bf16.msra.mxu0 %v497_v2  ;;  %489 = vmatpush3.bf16.msra.mxu1 %v497_v2 }
   0xc   :  { %453 = vmatprep.subr.bf16.mxu0 %v498_v3  ;;  %482 = vmatprep.subr.bf16.mxu1 %v498_v3 }
   0xf   :  { %454 = vmatpush3.bf16.msra.mxu0 %v498_v3  ;;  %490 = vmatpush3.bf16.msra.mxu1 %v498_v3 }
  0x10   :  { %455 = vmatprep.subr.bf16.mxu0 %v499_v5  ;;  %483 = vmatprep.subr.bf16.mxu1 %v499_v5 }
  0x13   :  { %456 = vmatpush3.bf16.msra.mxu0 %v499_v5  ;;  %491 = vmatpush3.bf16.msra.mxu1 %v499_v5 }
  0x14   :  { %457 = vmatprep.subr.bf16.mxu0 %v500_v7  ;;  %484 = vmatprep.subr.bf16.mxu1 %v500_v7 }
  0x17   :  { %458 = vmatpush3.bf16.msra.mxu0 %v500_v7  ;;  %492 = vmatpush3.bf16.msra.mxu1 %v500_v7 }
  0x18   :  { %459 = vmatprep.subr.bf16.mxu0 %v501_v8  ;;  %485 = vmatprep.subr.bf16.mxu1 %v501_v8 }
  0x1b   :  { %460 = vmatpush3.bf16.msra.mxu0 %v501_v8  ;;  %493 = vmatpush3.bf16.msra.mxu1 %v501_v8 }
  0x1c   :  { %461 = vmatprep.subr.bf16.mxu0 %v502_v9  ;;  %486 = vmatprep.subr.bf16.mxu1 %v502_v9 }
  0x1f   :  { %462 = vmatpush3.bf16.msra.mxu0 %v502_v9  ;;  %494 = vmatpush3.bf16.msra.mxu1 %v502_v9 }
  0x22   :  { %464 = vmatmul.mubr.bf16.vlgmr.msra.gmra.mrb[0].mxu0 %v504_v10  ;;  %472 = vmatmul.mubr.bf16.vlgmr.msra.gmra.mrb[0].mxu1 %v508_v11 }
  0x23   :  { %467 = vmatprep.mubr.bf16.mxu0 %v505_v12  ;;  %475 = vmatprep.mubr.bf16.mxu1 %v509_v13 }
  0x2a   :  { %468 = vmatmul.mubr.bf16.gmra.mrb[4].mxu0 %v506_v14  ;;  %476 = vmatmul.mubr.bf16.gmra.mrb[4].mxu1 %v510_v15 }
  0xf5   :  { %v465_v16 = vpop.f32.mrb[0].mxu0  ;;  %v473_v17 = vpop.f32.mrb[0].mxu1 }
  0xf6   :  { %329 = vst [vmem:[%s640_s2 + $0x10] sm:$0xff] %v465_v16  ;;  %v213_v18 = vpop.f32.mrb[1].mxu0  ;;  %337 = vst [vmem:[%s640_s2 + $0x50] sm:$0xff] %v473_v17  ;;  %v245_v19 = vpop.f32.mrb[1].mxu1  ;;  %v366_v27 = vmul.f32 %v465_v16, %v465_v16  ;;  %v374_v59 = vmul.f32 %v473_v17, %v473_v17 }
  0xf7   :  { %327 = vst [vmem:[%s640_s2] sm:$0xff] %v213_v18  ;;  %v466_v20 = vpop.f32.mrb[2].mxu0  ;;  %335 = vst [vmem:[%s640_s2 + $0x40] sm:$0xff] %v245_v19  ;;  %v474_v21 = vpop.f32.mrb[2].mxu1  ;;  %v364_v24 = vmul.f32 %v213_v18, %v213_v18  ;;  %v372_v53 = vmul.f32 %v245_v19, %v245_v19 }
  0xf8   :  { %330 = vst [vmem:[%s640_s2 + $0x18] sm:$0xff] %v466_v20  ;;  %v216_v22 = vpop.f32.mrb[3].mxu0  ;;  %338 = vst [vmem:[%s640_s2 + $0x58] sm:$0xff] %v474_v21  ;;  %v248_v23 = vpop.f32.mrb[3].mxu1  ;;  %v367_v30 = vmul.f32 %v466_v20, %v466_v20  ;;  %v375_v62 = vmul.f32 %v474_v21, %v474_v21 }
  0xf9   :  { %328 = vst [vmem:[%s640_s2 + $0x8] sm:$0xff] %v216_v22  ;;  %v343_v25 = vadd.f32 %v216_v22, %v213_v18  ;;  %v365_v26 = vmul.f32 %v216_v22, %v216_v22  ;;  %336 = vst [vmem:[%s640_s2 + $0x48] sm:$0xff] %v248_v23  ;;  %v373_v58 = vmul.f32 %v248_v23, %v248_v23 }
  0xfb   :  { %v344_v28 = vadd.f32 %v465_v16, %v343_v25  ;;  %v380_v29 = vadd.f32 %v365_v26, %v364_v24 }
  0xfd   :  { %v381_v31 = vadd.f32 %v380_v29, %v366_v27  ;;  %v469_v32 = vpop.f32.mrb[4].mxu0  ;;  %v345_v33 = vadd.f32 %v466_v20, %v344_v28  ;;  %v477_v34 = vpop.f32.mrb[4].mxu1 }
  0xfe   :  { %333 = vst [vmem:[%s640_s2 + $0x30] sm:$0xff] %v469_v32  ;;  %v229_v35 = vpop.f32.mrb[5].mxu0  ;;  %341 = vst [vmem:[%s640_s2 + $0x70] sm:$0xff] %v477_v34  ;;  %v261_v36 = vpop.f32.mrb[5].mxu1  ;;  %v370_v47 = vmul.f32 %v469_v32, %v469_v32  ;;  %v378_v7 = vmul.f32 %v477_v34, %v477_v34 }
  0xff   :  { %331 = vst [vmem:[%s640_s2 + $0x20] sm:$0xff] %v229_v35  ;;  %v346_v37 = vadd.f32 %v345_v33, %v229_v35  ;;  %v368_v38 = vmul.f32 %v229_v35, %v229_v35  ;;  %v382_v39 = vadd.f32 %v381_v31, %v367_v30  ;;  %v470_v40 = vpop.f32.mrb[6].mxu0  ;;  %339 = vst [vmem:[%s640_s2 + $0x60] sm:$0xff] %v261_v36  ;;  %v478_v41 = vpop.f32.mrb[6].mxu1 }
 0x100   :  { %334 = vst [vmem:[%s640_s2 + $0x38] sm:$0xff] %v470_v40  ;;  %v232_v42 = vpop.f32.mrb[7].mxu0  ;;  %342 = vst [vmem:[%s640_s2 + $0x78] sm:$0xff] %v478_v41  ;;  %v264_v43 = vpop.f32.mrb[7].mxu1  ;;  %v371_v50 = vmul.f32 %v470_v40, %v470_v40  ;;  %v376_v1 = vmul.f32 %v261_v36, %v261_v36  ;;  %v379_v10 = vmul.f32 %v478_v41, %v478_v41 }
 0x101   :  { %v383_v44 = vadd.f32 %v382_v39, %v368_v38  ;;  %332 = vst [vmem:[%s640_s2 + $0x28] sm:$0xff] %v232_v42  ;;  %v347_v45 = vadd.f32 %v346_v37, %v232_v42  ;;  %v369_v46 = vmul.f32 %v232_v42, %v232_v42  ;;  %340 = vst [vmem:[%s640_s2 + $0x68] sm:$0xff] %v264_v43 }
 0x102   :  { %v377_v6 = vmul.f32 %v264_v43, %v264_v43 }
 0x103   :  { %v348_v48 = vadd.f32 %v469_v32, %v347_v45  ;;  %v384_v49 = vadd.f32 %v383_v44, %v369_v46 }
 0x105   :  { %v385_v51 = vadd.f32 %v384_v49, %v370_v47  ;;  %v349_v52 = vadd.f32 %v470_v40, %v348_v48 }
 0x107   :  { %v350_v54 = vadd.f32 %v349_v52, %v245_v19  ;;  %v386_v55 = vadd.f32 %v385_v51, %v371_v50 }
 0x109   :  { %v387_v56 = vadd.f32 %v386_v55, %v372_v53  ;;  %v351_v57 = vadd.f32 %v350_v54, %v248_v23 }
 0x10b   :  { %v352_v60 = vadd.f32 %v473_v17, %v351_v57  ;;  %v388_v61 = vadd.f32 %v387_v56, %v373_v58 }
 0x10d   :  { %v389_v63 = vadd.f32 %v388_v61, %v374_v59  ;;  %v353_v0 = vadd.f32 %v474_v21, %v352_v60 }
 0x10f   :  { %v354_v2 = vadd.f32 %v353_v0, %v261_v36  ;;  %v390_v3 = vadd.f32 %v389_v63, %v375_v62 }
 0x111   :  { %v391_v4 = vadd.f32 %v390_v3, %v376_v1  ;;  %v355_v5 = vadd.f32 %v354_v2, %v264_v43 }
 0x113   :  { %v356_v8 = vadd.f32 %v477_v34, %v355_v5  ;;  %v392_v9 = vadd.f32 %v391_v4, %v377_v6 }
 0x115   :  { %v357_v11 = vadd.f32 %v478_v41, %v356_v8  ;;  %v393_v12 = vadd.f32 %v392_v9, %v378_v7 }
 0x117   :  { %v358_v13 = vrot.slane %v357_v11, 4  ;;  %v394_v14 = vadd.f32 %v393_v12, %v379_v10 }
 0x119   :  { %v359_v15 = vadd.f32 %v358_v13, %v357_v11  ;;  %v395_v16 = vrot.slane %v394_v14, 4 }
 0x11b   :  { %v360_v17 = vrot.slane %v359_v15, 2  ;;  %v396_v18 = vadd.f32 %v395_v16, %v394_v14 }
 0x11d   :  { %v361_v19 = vadd.f32 %v360_v17, %v359_v15  ;;  %v397_v20 = vrot.slane %v396_v18, 2 }
 0x11f   :  { %v362_v21 = vrot.slane %v361_v19, 1  ;;  %v398_v22 = vadd.f32 %v397_v20, %v396_v18 }
 0x121   :  { %v363_v23 = vadd.f32 %v362_v21, %v361_v19  ;;  %v399_v24 = vrot.slane %v398_v22, 1 }
 0x123   :  { %v400_v25 = vadd.f32 %v399_v24, %v398_v22  ;;  %401 = vst [vmem:[%s641_s3] sm:$0x1] %v363_v23 }
 0x125   :  { %402 = vst [vmem:[%s642_s4] sm:$0x1] %v400_v25 }

// kernel: bottleneck_forward.15
= control target key start
LH: loop header
LB: loop body
LE: loop exit
PB: predicated region body
PF: predicated region fallthrough
CT: control target
= control target key end

     0   :  { %s367_s0 = inlined_call_operand.vmem [shape: f32[128,128], index: 0, kind: input, shape index: {}]   ;;  %s368_s1 = inlined_call_operand.vmem [shape: f32[1,128], index: 1, kind: input, shape index: {}]   ;;  %s369_s2 = inlined_call_operand.vmem [shape: f32[1,128], index: 2, kind: input, shape index: {}]   ;;  %s370_s3 = inlined_call_operand.vmem [shape: f32[128,128], index: 3, kind: input, shape index: {}]   ;;  %s371_s4 = inlined_call_operand.hbm [shape: f32[128,128], index: 4, kind: output, shape index: {}]  }
   0x1   :  { %v18_v0 = vld [vmem:[%s367_s0] sm:$0xff]  ;;  %v19_v4 = vld [vmem:[%s367_s0 + $0x8] sm:$0xff]  ;;  %v20_v7 = vld [vmem:[%s367_s0 + $0x10] sm:$0xff] }
   0x2   :  { %v223_v1 = vld [vmem:[%s368_s1] ss:$0 sm:$0xff]  ;;  %v21_v8 = vld [vmem:[%s367_s0 + $0x18] sm:$0xff]  ;;  %v81_v10 = vld [vmem:[%s370_s3 + $0x8] sm:$0xff] }
   0x3   :  { %v228_v2 = vld [vmem:[%s369_s2] ss:$0 sm:$0xff]  ;;  %v41_v3 = vmul.f32 %v223_v1, %v18_v0  ;;  %v42_v6 = vmul.f32 %v223_v1, %v19_v4  ;;  %v43_v11 = vmul.f32 %v223_v1, %v20_v7  ;;  %v82_v12 = vld [vmem:[%s370_s3 + $0x10] sm:$0xff]  ;;  %v44_v13 = vmul.f32 %v223_v1, %v21_v8  ;;  %v83_v16 = vld [vmem:[%s370_s3 + $0x18] sm:$0xff] }
   0x4   :  { %v80_v5 = vld [vmem:[%s370_s3] sm:$0xff]  ;;  %v23_v18 = vld [vmem:[%s367_s0 + $0x28] sm:$0xff]  ;;  %v24_v19 = vld [vmem:[%s367_s0 + $0x30] sm:$0xff] }
   0x5   :  { %v64_v9 = vadd.f32 %v228_v2, %v41_v3  ;;  %v22_v14 = vld [vmem:[%s367_s0 + $0x20] sm:$0xff]  ;;  %v65_v15 = vadd.f32 %v228_v2, %v42_v6  ;;  %v66_v21 = vadd.f32 %v228_v2, %v43_v11  ;;  %v67_v22 = vadd.f32 %v228_v2, %v44_v13  ;;  %v25_v25 = vld [vmem:[%s367_s0 + $0x38] sm:$0xff]  ;;  %v85_v28 = vld [vmem:[%s370_s3 + $0x28] sm:$0xff] }
   0x6   :  { %v45_v17 = vmul.f32 %v223_v1, %v22_v14  ;;  %v84_v23 = vld [vmem:[%s370_s3 + $0x20] sm:$0xff]  ;;  %v46_v24 = vmul.f32 %v223_v1, %v23_v18  ;;  %v47_v29 = vmul.f32 %v223_v1, %v24_v19  ;;  %v48_v30 = vmul.f32 %v223_v1, %v25_v25  ;;  %v86_v36 = vld [vmem:[%s370_s3 + $0x30] sm:$0xff]  ;;  %v87_v37 = vld [vmem:[%s370_s3 + $0x38] sm:$0xff] }
   0x7   :  { %v96_v20 = vadd.f32 %v80_v5, %v64_v9  ;;  %v97_v26 = vadd.f32 %v81_v10, %v65_v15  ;;  %v26_v31 = vld [vmem:[%s367_s0 + $0x40] sm:$0xff]  ;;  %v98_v33 = vadd.f32 %v82_v12, %v66_v21  ;;  %v99_v34 = vadd.f32 %v83_v16, %v67_v22  ;;  %v27_v38 = vld [vmem:[%s367_s0 + $0x48] sm:$0xff]  ;;  %v28_v43 = vld [vmem:[%s367_s0 + $0x50] sm:$0xff] }
   0x8   :  { %v68_v27 = vadd.f32 %v228_v2, %v45_v17  ;;  %v69_v35 = vadd.f32 %v228_v2, %v46_v24  ;;  %v70_v41 = vadd.f32 %v228_v2, %v47_v29  ;;  %v71_v42 = vadd.f32 %v228_v2, %v48_v30  ;;  %v29_v44 = vld [vmem:[%s367_s0 + $0x58] sm:$0xff]  ;;  %v30_v49 = vld [vmem:[%s367_s0 + $0x60] sm:$0xff]  ;;  %v89_v55 = vld [vmem:[%s370_s3 + $0x48] sm:$0xff] }
   0x9   :  { %v112_v32 = vmax.f32 %v96_v20, 0.0  ;;  %v113_v39 = vmax.f32 %v97_v26, 0.0  ;;  %v114_v45 = vmax.f32 %v98_v33, 0.0  ;;  %v115_v46 = vmax.f32 %v99_v34, 0.0  ;;  %v88_v53 = vld [vmem:[%s370_s3 + $0x40] sm:$0xff]  ;;  %v31_v56 = vld [vmem:[%s367_s0 + $0x68] sm:$0xff] }
   0xa   :  { %v100_v40 = vadd.f32 %v84_v23, %v68_v27  ;;  %v101_v47 = vadd.f32 %v85_v28, %v69_v35  ;;  %v49_v48 = vmul.f32 %v223_v1, %v26_v31  ;;  %v102_v51 = vadd.f32 %v86_v36, %v70_v41  ;;  %v32_v61 = vld [vmem:[%s367_s0 + $0x70] sm:$0xff]  ;;  %v33_v62 = vld [vmem:[%s367_s0 + $0x78] sm:$0xff] }
   0xb   :  { %128 = vst [vmem:[#allocation2] sm:$0xff] %v112_v32  ;;  %129 = vst [vmem:[#allocation2 + $0x8] sm:$0xff] %v113_v39  ;;  %v103_v52 = vadd.f32 %v87_v37, %v71_v42  ;;  %v50_v54 = vmul.f32 %v223_v1, %v27_v38  ;;  %v51_v59 = vmul.f32 %v223_v1, %v28_v43 }
   0xc   :  { %v116_v50 = vmax.f32 %v100_v40, 0.0  ;;  %130 = vst [vmem:[#allocation2 + $0x10] sm:$0xff] %v114_v45  ;;  %131 = vst [vmem:[#allocation2 + $0x18] sm:$0xff] %v115_v46  ;;  %v117_v57 = vmax.f32 %v101_v47, 0.0  ;;  %v72_v58 = vadd.f32 %v228_v2, %v49_v48  ;;  %v52_v60 = vmul.f32 %v223_v1, %v29_v44 }
   0xd   :  { %9 = vsyncpa [#allocation3], 0  ;;  %v118_v63 = vmax.f32 %v102_v51, 0.0  ;;  %v119_v0 = vmax.f32 %v103_v52, 0.0  ;;  %v73_v3 = vadd.f32 %v228_v2, %v50_v54  ;;  %v90_v4 = vld [vmem:[%s370_s3 + $0x50] sm:$0xff]  ;;  %v91_v5 = vld [vmem:[%s370_s3 + $0x58] sm:$0xff]  ;;  %v53_v6 = vmul.f32 %v223_v1, %v30_v49 }
   0xe   :  { %132 = vst [vmem:[#allocation2 + $0x20] sm:$0xff] %v116_v50  ;;  %133 = vst [vmem:[#allocation2 + $0x28] sm:$0xff] %v117_v57  ;;  %v104_v7 = vadd.f32 %v88_v53, %v72_v58  ;;  %v74_v8 = vadd.f32 %v228_v2, %v51_v59  ;;  %v75_v9 = vadd.f32 %v228_v2, %v52_v60  ;;  %v92_v10 = vld [vmem:[%s370_s3 + $0x60] sm:$0xff]  ;;  %v93_v14 = vld [vmem:[%s370_s3 + $0x68] sm:$0xff]  ;;  %s189_s1 = smov [#allocation2]  }
   0xf   :  { %v54_v11 = vmul.f32 %v223_v1, %v31_v56  ;;  %134 = vst [vmem:[#allocation2 + $0x30] sm:$0xff] %v118_v63  ;;  %135 = vst [vmem:[#allocation2 + $0x38] sm:$0xff] %v119_v0  ;;  %v105_v12 = vadd.f32 %v89_v55, %v73_v3  ;;  %v76_v13 = vadd.f32 %v228_v2, %v53_v6  ;;  %v94_v21 = vld [vmem:[%s370_s3 + $0x70] sm:$0xff]  ;;  %v95_v22 = vld [vmem:[%s370_s3 + $0x78] sm:$0xff]  ;;  %s149_s26 = sshll.u32 %s189_s1, 4  ;;  %s150_s26 = int_to_ptr.vmem [resolvable:$true] %s149_s26 }
  0x10   :  { %v55_v15 = vmul.f32 %v223_v1, %v32_v61  ;;  %v56_v16 = vmul.f32 %v223_v1, %v33_v62  ;;  %v120_v17 = vmax.f32 %v104_v7, 0.0  ;;  %v106_v18 = vadd.f32 %v90_v4, %v74_v8  ;;  %s165_s3 = scalar_lea.vmem %s150_s26, 2048  ;;  %p170_p1 = scmp.lt.s32.totalorder %s150_s26, %s150_s26 }
  0x11   :  { %v107_v19 = vadd.f32 %v91_v5, %v75_v9  ;;  %v77_v20 = vadd.f32 %v228_v2, %v54_v11  ;;  %v121_v23 = vmax.f32 %v105_v12, 0.0  ;;  %v108_v24 = vadd.f32 %v92_v10, %v76_v13  ;;  %p166_p0 = scmp.ne.s32.totalorder %s150_s26, %s165_s3  ;;  %p171_p2 = scmp.lt.s32.totalorder %s165_s3, %s165_s3 }
  0x12   :  { %v78_v25 = vadd.f32 %v228_v2, %v55_v15  ;;  %v79_v26 = vadd.f32 %v228_v2, %v56_v16  ;;  %136 = vst [vmem:[#allocation2 + $0x40] sm:$0xff] %v120_v17  ;;  %v122_v1 = vmax.f32 %v106_v18, 0.0 }
  0x13   :  { %v123_v27 = vmax.f32 %v107_v19, 0.0  ;;  %v109_v28 = vadd.f32 %v93_v14, %v77_v20  ;;  %137 = vst [vmem:[#allocation2 + $0x48] sm:$0xff] %v121_v23  ;;  %v124_v29 = vmax.f32 %v108_v24, 0.0  ;;  %p172_p3 = por %p171_p2, %p170_p1 }
  0x14   :  { %v110_v30 = vadd.f32 %v94_v21, %v78_v25  ;;  %v111_v31 = vadd.f32 %v95_v22, %v79_v26  ;;  %138 = vst [vmem:[#allocation2 + $0x50] sm:$0xff] %v122_v1 }
  0x15   :  { %139 = vst [vmem:[#allocation2 + $0x58] sm:$0xff] %v123_v27  ;;  %v125_v32 = vmax.f32 %v109_v28, 0.0  ;;  %140 = vst [vmem:[#allocation2 + $0x60] sm:$0xff] %v124_v29  ;;  %p173_p4 = pnand %p172_p3, %p166_p0 }
  0x16   :  { %v126_v33 = vmax.f32 %v110_v30, 0.0  ;;  %v127_v34 = vmax.f32 %v111_v31, 0.0 }
  0x17   :  { %141 = vst [vmem:[#allocation2 + $0x68] sm:$0xff] %v125_v32 }
  0x18   :  { %142 = vst [vmem:[#allocation2 + $0x70] sm:$0xff] %v126_v33  ;;  %143 = vst [vmem:[#allocation2 + $0x78] sm:$0xff] %v127_v34 }
  0x19   :  { %176 = shalt.err (!%p173_p4)
}
  0x1a   :  { %s177_s28 = scalar_lea.hbm %s371_s4, 2048 }
  0x1b   :  { %p178_p5 = scmp.ne.s32.totalorder %s371_s4, %s177_s28  ;;  %p181_p6 = scmp.lt.u32.totalorder %s177_s28, %s371_s4 }
  0x1d   :  { %p183_p7 = pnand %p181_p6, %p178_p5 }
  0x1f   :  { %186 = shalt.err (!%p183_p7)
}
  0x20   :  { %s190_s7 = smov 128   ;;  %s191_s8 = smov 8  }
  0x21   :  { %155 = dma.vmem_to_hbm [thread:$0]  %s150_s26, 2048, %s371_s4, [#allocation3], %s190_s7, %s190_s7, %s191_s8  }
  0x22   :  { %187 = dma.done.wait [#allocation3], 2048  }
  0x23   :  { %188 = vsyncadd [#allocation3], 4294965248 }
  0x24   :  { %159 = vsyncpa [#allocation3], 1 }

// kernel: bottleneck_forward.13
= control target key start
LH: loop header
LB: loop body
LE: loop exit
PB: predicated region body
PF: predicated region fallthrough
CT: control target
= control target key end

     0   :  { %s220_s0 = inlined_call_operand.vmem [shape: f32[128,128], index: 0, kind: input, shape index: {}]   ;;  %s221_s1 = inlined_call_operand.vmem [shape: f32[1,128], index: 1, kind: input, shape index: {}]   ;;  %s222_s2 = inlined_call_operand.vmem [shape: f32[1,128], index: 2, kind: input, shape index: {}]   ;;  %s223_s3 = inlined_call_operand.vmem [shape: f32[128,128], index: 3, kind: output, shape index: {}]  }
   0x1   :  { %v14_v0 = vld [vmem:[%s220_s0] sm:$0xff]  ;;  %v15_v4 = vld [vmem:[%s220_s0 + $0x8] sm:$0xff]  ;;  %v16_v5 = vld [vmem:[%s220_s0 + $0x10] sm:$0xff] }
   0x2   :  { %v96_v1 = vld [vmem:[%s221_s1] ss:$0 sm:$0xff]  ;;  %v17_v6 = vld [vmem:[%s220_s0 + $0x18] sm:$0xff]  ;;  %v19_v11 = vld [vmem:[%s220_s0 + $0x28] sm:$0xff] }
   0x3   :  { %v97_v2 = vld [vmem:[%s222_s2] ss:$0 sm:$0xff]  ;;  %v37_v3 = vmul.f32 %v96_v1, %v14_v0  ;;  %v38_v7 = vmul.f32 %v96_v1, %v15_v4  ;;  %v39_v8 = vmul.f32 %v96_v1, %v16_v5  ;;  %v40_v9 = vmul.f32 %v96_v1, %v17_v6  ;;  %v20_v12 = vld [vmem:[%s220_s0 + $0x30] sm:$0xff]  ;;  %v21_v17 = vld [vmem:[%s220_s0 + $0x38] sm:$0xff] }
   0x4   :  { %v18_v10 = vld [vmem:[%s220_s0 + $0x20] sm:$0xff]  ;;  %v42_v15 = vmul.f32 %v96_v1, %v19_v11  ;;  %v43_v16 = vmul.f32 %v96_v1, %v20_v12  ;;  %v23_v19 = vld [vmem:[%s220_s0 + $0x48] sm:$0xff]  ;;  %v44_v23 = vmul.f32 %v96_v1, %v21_v17  ;;  %v24_v24 = vld [vmem:[%s220_s0 + $0x50] sm:$0xff] }
   0x5   :  { %v60_v13 = vadd.f32 %v97_v2, %v37_v3  ;;  %v41_v14 = vmul.f32 %v96_v1, %v18_v10  ;;  %v22_v18 = vld [vmem:[%s220_s0 + $0x40] sm:$0xff]  ;;  %v61_v20 = vadd.f32 %v97_v2, %v38_v7  ;;  %v62_v21 = vadd.f32 %v97_v2, %v39_v8  ;;  %v25_v25 = vld [vmem:[%s220_s0 + $0x58] sm:$0xff]  ;;  %v27_v31 = vld [vmem:[%s220_s0 + $0x68] sm:$0xff] }
   0x6   :  { %v63_v22 = vadd.f32 %v97_v2, %v40_v9  ;;  %v26_v26 = vld [vmem:[%s220_s0 + $0x60] sm:$0xff]  ;;  %v65_v28 = vadd.f32 %v97_v2, %v42_v15  ;;  %v66_v29 = vadd.f32 %v97_v2, %v43_v16  ;;  %v45_v30 = vmul.f32 %v96_v1, %v22_v18  ;;  %v28_v32 = vld [vmem:[%s220_s0 + $0x70] sm:$0xff]  ;;  %v29_v33 = vld [vmem:[%s220_s0 + $0x78] sm:$0xff] }
   0x7   :  { %76 = vst [vmem:[%s223_s3] sm:$0xff] %v60_v13  ;;  %v64_v27 = vadd.f32 %v97_v2, %v41_v14  ;;  %77 = vst [vmem:[%s223_s3 + $0x8] sm:$0xff] %v61_v20  ;;  %v67_v34 = vadd.f32 %v97_v2, %v44_v23  ;;  %v46_v35 = vmul.f32 %v96_v1, %v23_v19 }
   0x8   :  { %78 = vst [vmem:[%s223_s3 + $0x10] sm:$0xff] %v62_v21  ;;  %79 = vst [vmem:[%s223_s3 + $0x18] sm:$0xff] %v63_v22  ;;  %v47_v36 = vmul.f32 %v96_v1, %v24_v24  ;;  %v48_v37 = vmul.f32 %v96_v1, %v25_v25  ;;  %v68_v38 = vadd.f32 %v97_v2, %v45_v30 }
   0x9   :  { %80 = vst [vmem:[%s223_s3 + $0x20] sm:$0xff] %v64_v27  ;;  %81 = vst [vmem:[%s223_s3 + $0x28] sm:$0xff] %v65_v28  ;;  %v49_v39 = vmul.f32 %v96_v1, %v26_v26  ;;  %v50_v40 = vmul.f32 %v96_v1, %v27_v31  ;;  %v51_v41 = vmul.f32 %v96_v1, %v28_v32 }
   0xa   :  { %82 = vst [vmem:[%s223_s3 + $0x30] sm:$0xff] %v66_v29  ;;  %83 = vst [vmem:[%s223_s3 + $0x38] sm:$0xff] %v67_v34  ;;  %v69_v42 = vadd.f32 %v97_v2, %v46_v35  ;;  %v70_v43 = vadd.f32 %v97_v2, %v47_v36  ;;  %v71_v44 = vadd.f32 %v97_v2, %v48_v37 }
   0xb   :  { %v52_v45 = vmul.f32 %v96_v1, %v29_v33  ;;  %84 = vst [vmem:[%s223_s3 + $0x40] sm:$0xff] %v68_v38  ;;  %v72_v46 = vadd.f32 %v97_v2, %v49_v39  ;;  %v73_v47 = vadd.f32 %v97_v2, %v50_v40  ;;  %v74_v48 = vadd.f32 %v97_v2, %v51_v41 }
   0xc   :  { %85 = vst [vmem:[%s223_s3 + $0x48] sm:$0xff] %v69_v42  ;;  %86 = vst [vmem:[%s223_s3 + $0x50] sm:$0xff] %v70_v43 }
   0xd   :  { %87 = vst [vmem:[%s223_s3 + $0x58] sm:$0xff] %v71_v44  ;;  %v75_v49 = vadd.f32 %v97_v2, %v52_v45  ;;  %88 = vst [vmem:[%s223_s3 + $0x60] sm:$0xff] %v72_v46 }
   0xe   :  { %89 = vst [vmem:[%s223_s3 + $0x68] sm:$0xff] %v73_v47  ;;  %90 = vst [vmem:[%s223_s3 + $0x70] sm:$0xff] %v74_v48 }
   0xf   :  { %91 = vst [vmem:[%s223_s3 + $0x78] sm:$0xff] %v75_v49 }

</bundles_post_ra>
